<compile_context>
chip_gen: v7x
topology: tpu7x:2x2x1
jax: 0.10.0
libtpu: 0.0.40
codegen_flags: <defaults>
</compile_context>

<pallas_src>
import numpy as np
import jax
import jax.numpy as jnp
from jax import lax
from jax.experimental import pallas as pl
from jax.experimental.pallas import tpu as pltpu

# ----------------------------- static config --------------------------------
VOX = 8                          # voxels per axis
V_TOT = VOX * VOX * VOX          # 512 flat voxels (lane axis inside the kernel)
F_IMG = 4                        # image feature channels
C_MEAN = 3 + F_IMG               # mean xyz + mean feats rows of the voxel grid
C_PAY = C_MEAN + 1               # xyz + feats + ones(count) fed to the scatter matmul
C_IN = C_PAY + 3                 # payload rows + normalized-xyz rows (kernel input)
C_VOX = C_MEAN + 3 + 1           # mean xyz + mean feats + voxel idx pos + occupancy
PROP_DIM = 4                     # proprio feature size
N_CHUNK = 2048                   # point-axis chunk for the one-hot scatter matmul

# viewpoint category bookkeeping (mirrors QFunction.__init__)
_viewpoint_agent_bounds = np.array([0.0, 0.0, 0.0, 1.0, 1.0, 1.0])
_viewpoint_resolution = np.array([0.25, 0.25, 0.5])
_vp_axes = ((_viewpoint_agent_bounds[3:] - _viewpoint_agent_bounds[:3])
            // _viewpoint_resolution).astype(int)
NVP = int(_vp_axes.sum())        # == 10


# ----------------------------- fused Pallas kernel ---------------------------
def _qfunction_kernel(pts_ref, prop_ref, voxpos_ref, wh_ref, wp_ref, zpos_ref,
                      vox_ref, qt_ref, qr_ref):
    """Fused voxelization + q-heads for a block of `bb` batch elements.

    pts_ref:    (bb, C_IN, N) f32   channel-major [xyz | feats | 1 | norm-xyz]
    prop_ref:   (bb, 1, 1+P) f32    lane-major [1 | proprio]
    voxpos_ref: (3, V) f32          channel-major normalized voxel index positions
    wh_ref:     (1+NVP, C_VOX) f32  packed head weights (row 0 = translation head)
    wp_ref:     (1+NVP, 1+P) f32    packed [bias | proprio weights]
    zpos_ref:   (1+NVP, V) f32      pre-folded constant voxel-position head term
    vox_ref:    (bb, C_VOX, V) f32  channel-major voxel grid (lane-dense stores)
    qt_ref:     (bb, 1, V) f32      translation q-values (lane-dense store)
    qr_ref:     (bb, NVP, 1) f32    viewpoint q-values
    """
    bb = pts_ref.shape[0]
    n = pts_ref.shape[2]
    v = vox_ref.shape[2]
    inv_v = 1.0 / float(v)

    wh = wh_ref[...]                                         # (1+NVP, C_VOX)

    for i in range(bb):                                      # static unrolled batch loop
        pts = pts_ref[i]                                     # (C_IN, N)

        # flat voxel index per point, lane-major (1, N): floor/clip/linearize of
        # the pre-normalized xyz rows -- no transposes, no scalar inputs.
        bins = jnp.clip(jnp.floor(pts[C_PAY:C_PAY + 3, :]), 0.0, float(VOX - 1))
        idx_row = (bins[0:1, :] * float(VOX * VOX)
                   + bins[1:2, :] * float(VOX)
                   + bins[2:3, :]).astype(jnp.int32)          # (1, N)

        # scatter-add as chunked bf16 one-hot matmuls; (V, chunk) orientation so
        # the per-point index only needs a (cheap) sublane broadcast.
        sums = jnp.zeros((C_PAY, v), jnp.float32)
        for s in range(0, n, N_CHUNK):
            l = min(N_CHUNK, n - s)
            iota_vn = lax.broadcasted_iota(jnp.int32, (v, l), 0)
            oh_t = (iota_vn == idx_row[:, s:s + l]).astype(jnp.bfloat16)   # (V, l)
            pay = pts[0:C_PAY, s:s + l].astype(jnp.bfloat16)               # (C_PAY, l)
            sums = sums + lax.dot_general(
                pay, oh_t, (((1,), (1,)), ((), ())),
                preferred_element_type=jnp.float32)                        # (C_PAY, V)

        counts = sums[C_PAY - 1:C_PAY, :]                                  # (1, V)
        inv_cnt = pl.reciprocal(jnp.maximum(counts, 1.0), approx=True)
        mean = sums[0:C_MEAN, :] * inv_cnt                                 # (C_MEAN, V)
        occ = (counts > 0.5).astype(jnp.float32)                           # (1, V)

        # voxel grid, written as lane-dense row-slice stores (no sublane concat)
        vox_ref[i, 0:C_MEAN, :] = mean
        vox_ref[i, C_MEAN:C_MEAN + 3, :] = voxpos_ref[...]
        vox_ref[i, C_MEAN + 3:C_VOX, :] = occ

        # q-heads: constant voxel-position term pre-folded into zpos_ref.
        z = (jnp.dot(wh[:, 0:C_MEAN], mean, preferred_element_type=jnp.float32)
             + wh[:, C_MEAN + 3:C_VOX] * occ
             + zpos_ref[...])                                              # (1+NVP, V)
        prop = prop_ref[i]                                                 # (1, 1+P)
        bias = jnp.sum(wp_ref[...] * prop, axis=1, keepdims=True)          # (1+NVP, 1)

        qt_ref[i] = z[0:1, :] + bias[0:1, :]                               # (1, V)
        qr_ref[i] = (jnp.sum(z[1:, :], axis=1, keepdims=True) * inv_v
                     + bias[1:, :])                                        # (NVP, 1)


# ----------------------------- pallas_call wrapper ----------------------------
def _batch_block(b):
    """Batch elements per grid step: fold the batch on single-TC chips,
    keep a batch-parallel grid on v7x (2 TensorCores per chip)."""
    try:
        kind = jax.devices()[0].device_kind.lower()
    except Exception:
        kind = ""
    multi_tc = ("v7" in kind) or ("7x" in kind)
    return 1 if (multi_tc and b > 1) else b


def _qfunction_fused(pts_cm, prop_aug, params, bb):
    b, c_in, n = pts_cm.shape
    v = params["vox_pos_cm"].shape[-1]
    nvp1 = params["w_heads_t"].shape[0]            # 1 + NVP
    p1 = params["w_prop_aug_t"].shape[1]           # 1 + PROP_DIM
    return pl.pallas_call(
        _qfunction_kernel,
        out_shape=(jax.ShapeDtypeStruct((b, C_VOX, v), jnp.float32),
                   jax.ShapeDtypeStruct((b, 1, v), jnp.float32),
                   jax.ShapeDtypeStruct((b, nvp1 - 1, 1), jnp.float32)),
        grid=(b // bb,),
        in_specs=[
            pl.BlockSpec((bb, c_in, n), lambda i: (i, 0, 0)),     # channel-major payload
            pl.BlockSpec((bb, 1, p1), lambda i: (i, 0, 0)),       # [1 | proprio], lane-major
            pl.BlockSpec((3, v), lambda i: (0, 0)),               # voxel positions (const)
            pl.BlockSpec((nvp1, C_VOX), lambda i: (0, 0)),        # packed head weights (const)
            pl.BlockSpec((nvp1, p1), lambda i: (0, 0)),           # packed bias/proprio (const)
            pl.BlockSpec((nvp1, v), lambda i: (0, 0)),            # folded voxpos head term
        ],
        out_specs=(pl.BlockSpec((bb, C_VOX, v), lambda i: (i, 0, 0)),
                   pl.BlockSpec((bb, 1, v), lambda i: (i, 0, 0)),
                   pl.BlockSpec((bb, nvp1 - 1, 1), lambda i: (i, 0, 0))),
        compiler_params=pltpu.CompilerParams(dimension_semantics=("parallel",)),
    )(pts_cm, prop_aug, params["vox_pos_cm"], params["w_heads_t"],
      params["w_prop_aug_t"], params["z_pos"])


# ----------------------------- forward (QFunction.forward) -------------------
def qfunction_forward(x, proprio, pcd, bounds, params):
    b = x[0][0].shape[0]

    # channel-major flatten: NCHW -> (b, C, H*W) is a pure reshape (no transpose).
    pcd_cm = jnp.concatenate([p.reshape(b, 3, -1) for p in pcd], axis=-1)
    image_features = [x[0][0]]
    feat_size = image_features[0].shape[1]
    feat_cm = jnp.concatenate(
        [p.reshape(b, feat_size, -1) for p in image_features], axis=-1)
    n = pcd_cm.shape[-1]

    # normalized coords (voxel units) as extra lane-major payload rows; the
    # kernel does the floor/clip/linearize itself (no flat-index input).
    bb_min = bounds[:, :3][:, :, None].astype(jnp.float32)      # (b, 3, 1)
    bb_max = bounds[:, 3:][:, :, None].astype(jnp.float32)
    norm = (pcd_cm.astype(jnp.float32) - bb_min) * (VOX / (bb_max - bb_min))

    ones = jnp.ones((b, 1, n), jnp.float32)
    pts_cm = jnp.concatenate(
        [pcd_cm.astype(jnp.float32), feat_cm.astype(jnp.float32), ones, norm],
        axis=1)                                                 # (b, C_IN, N)

    prop = proprio[0].astype(jnp.float32)                       # (b, P)
    prop_aug = jnp.concatenate([jnp.ones((b, 1), jnp.float32), prop],
                               axis=1)[:, None, :]              # (b, 1, 1+P)

    bb = _batch_block(b)
    vox_cm, q_trans_cm, q_rot_col = _qfunction_fused(pts_cm, prop_aug, params, bb)

    # channel-major (b, C_VOX, V) is already NCDHW once V is unflattened (x-major).
    voxel_grid = vox_cm.reshape(b, C_VOX, VOX, VOX, VOX)
    q_trans = q_trans_cm.reshape(b, 1, VOX, VOX, VOX)
    rot_and_grip_q = q_rot_col.reshape(b, NVP)
    return q_trans, rot_and_grip_q, voxel_grid


# ----------------------------- deterministic params --------------------------
def init_params(key):
    ks = jax.random.split(key, 3)
    scale = 0.1
    w_trans = scale * jax.random.normal(ks[0], (C_VOX, 1), jnp.float32)
    b_trans = jnp.zeros((1, 1), jnp.float32)
    w_rot = scale * jax.random.normal(ks[1], (C_VOX, NVP), jnp.float32)
    w_prop = scale * jax.random.normal(ks[2], (PROP_DIM, NVP), jnp.float32)
    b_rot = jnp.zeros((1, NVP), jnp.float32)

    # packed head weights, transposed for channel-major voxel features:
    #   row 0 = translation head, rows 1..NVP = viewpoint head
    w_heads_t = jnp.concatenate([w_trans, w_rot], axis=1).T          # (1+NVP, C_VOX)
    # packed [bias | proprio weights] slab (translation head uses no proprio)
    trans_row = jnp.concatenate([b_trans, jnp.zeros((1, PROP_DIM), jnp.float32)],
                                axis=1)                              # (1, 1+P)
    rot_rows = jnp.concatenate([b_rot.T, w_prop.T], axis=1)          # (NVP, 1+P)
    w_prop_aug_t = jnp.concatenate([trans_row, rot_rows], axis=0)    # (1+NVP, 1+P)

    # normalized voxel index positions, channel-major (3, V), x-major flattening
    ii = jnp.arange(VOX, dtype=jnp.float32) / (VOX - 1)
    gx, gy, gz = jnp.meshgrid(ii, ii, ii, indexing="ij")
    vox_pos_cm = jnp.stack([gx, gy, gz], axis=0).reshape(3, V_TOT)   # (3, V)

    # constant voxel-position contribution to the q-heads, folded out of the kernel
    z_pos = jnp.dot(w_heads_t[:, C_MEAN:C_MEAN + 3], vox_pos_cm)     # (1+NVP, V)

    return dict(w_heads_t=w_heads_t, w_prop_aug_t=w_prop_aug_t,
                vox_pos_cm=vox_pos_cm, z_pos=z_pos)


# ----------------------------------- main -------------------------------------
if __name__ == "__main__":
    key = jax.random.PRNGKey(0)
    k1, k2, k3, k4 = jax.random.split(key, 4)

    b, H, W = 2, 16, 16
    pcd0 = jax.random.uniform(k1, (b, 3, H, W), jnp.float32)          # NCHW xyz maps
    img_feat = jax.random.normal(k2, (b, F_IMG, H, W), jnp.float32)   # NCHW features
    proprio0 = jax.random.normal(k3, (b, PROP_DIM), jnp.float32)
    bounds = jnp.tile(jnp.array([[0., 0., 0., 1., 1., 1.]], jnp.float32), (b, 1))

    params = init_params(k4)

    x = [[img_feat]]
    proprio = [proprio0]
    pcd = [pcd0]

    q_trans, rot_and_grip_q, voxel_grid = qfunction_forward(x, proprio, pcd,
                                                            bounds, params)
    jax.block_until_ready((q_trans, rot_and_grip_q, voxel_grid))

    assert q_trans.shape == (b, 1, VOX, VOX, VOX)
    assert rot_and_grip_q.shape == (b, NVP)
    assert voxel_grid.shape == (b, C_VOX, VOX, VOX, VOX)
    print("KERNEL_OK")
</pallas_src>

<mosaic_0001>
module attributes {stable_mosaic.version = 11 : i64} {
  func.func @_qfunction_kernel(%arg0: i32, %arg1: memref<2x11x256xf32, #tpu.memory_space<vmem>>, %arg2: memref<2x1x5xf32, #tpu.memory_space<vmem>>, %arg3: memref<3x512xf32, #tpu.memory_space<vmem>>, %arg4: memref<11x11xf32, #tpu.memory_space<vmem>>, %arg5: memref<11x5xf32, #tpu.memory_space<vmem>>, %arg6: memref<11x512xf32, #tpu.memory_space<vmem>>, %arg7: memref<2x11x512xf32, #tpu.memory_space<vmem>>, %arg8: memref<2x1x512xf32, #tpu.memory_space<vmem>>, %arg9: memref<2x10x1xf32, #tpu.memory_space<vmem>>) attributes {dimension_semantics = [#tpu.dimension_semantics<parallel>], iteration_bounds = array<i64: 1>, scalar_prefetch = 0 : i64, scratch_operands = 0 : i64, tpu.core_type = #tpu.core_type<tc>, window_params = [{transform_indices = @transform_0, window_bounds = array<i64: 2, 11, 256>}, {transform_indices = @transform_1, window_bounds = array<i64: 2, 1, 5>}, {pipeline_mode = #tpu.pipeline_mode<synchronous>, transform_indices = @transform_2, window_bounds = array<i64: 3, 512>}, {pipeline_mode = #tpu.pipeline_mode<synchronous>, transform_indices = @transform_3, window_bounds = array<i64: 11, 11>}, {pipeline_mode = #tpu.pipeline_mode<synchronous>, transform_indices = @transform_4, window_bounds = array<i64: 11, 5>}, {pipeline_mode = #tpu.pipeline_mode<synchronous>, transform_indices = @transform_5, window_bounds = array<i64: 11, 512>}, {transform_indices = @transform_6, window_bounds = array<i64: 2, 11, 512>}, {transform_indices = @transform_7, window_bounds = array<i64: 2, 1, 512>}, {transform_indices = @transform_8, window_bounds = array<i64: 2, 10, 1>}]} {
    %c0 = arith.constant 0 : index
    %c0_0 = arith.constant 0 : index
    %0 = vector.load %arg4[%c0, %c0_0] : memref<11x11xf32, #tpu.memory_space<vmem>>, vector<11x11xf32>
    %c0_1 = arith.constant 0 : index
    %c0_2 = arith.constant 0 : index
    %c0_3 = arith.constant 0 : index
    %1 = vector.load %arg1[%c0_1, %c0_2, %c0_3] : memref<2x11x256xf32, #tpu.memory_space<vmem>>, vector<1x11x256xf32>
    %2 = vector.shape_cast %1 : vector<1x11x256xf32> to vector<11x256xf32>
    %3 = vector.extract_strided_slice %2 {offsets = [8, 0], sizes = [3, 256], strides = [1, 1]} : vector<11x256xf32> to vector<3x256xf32>
    %4 = math.floor %3 : vector<3x256xf32>
    %cst = arith.constant 0.000000e+00 : f32
    %cst_4 = arith.constant 7.000000e+00 : f32
    %5 = vector.broadcast %cst : f32 to vector<3x256xf32>
    %6 = arith.maximumf %5, %4 : vector<3x256xf32>
    %7 = vector.broadcast %cst_4 : f32 to vector<3x256xf32>
    %8 = arith.minimumf %7, %6 : vector<3x256xf32>
    %9 = vector.extract_strided_slice %8 {offsets = [0, 0], sizes = [1, 256], strides = [1, 1]} : vector<3x256xf32> to vector<1x256xf32>
    %cst_5 = arith.constant 6.400000e+01 : f32
    %10 = vector.broadcast %cst_5 : f32 to vector<1x256xf32>
    %11 = arith.mulf %9, %10 : vector<1x256xf32>
    %12 = vector.extract_strided_slice %8 {offsets = [1, 0], sizes = [1, 256], strides = [1, 1]} : vector<3x256xf32> to vector<1x256xf32>
    %cst_6 = arith.constant 8.000000e+00 : f32
    %13 = vector.broadcast %cst_6 : f32 to vector<1x256xf32>
    %14 = arith.mulf %12, %13 : vector<1x256xf32>
    %15 = arith.addf %11, %14 : vector<1x256xf32>
    %16 = vector.extract_strided_slice %8 {offsets = [2, 0], sizes = [1, 256], strides = [1, 1]} : vector<3x256xf32> to vector<1x256xf32>
    %17 = arith.addf %15, %16 : vector<1x256xf32>
    %18 = arith.fptosi %17 : vector<1x256xf32> to vector<1x256xi32>
    %cst_7 = arith.constant 0.000000e+00 : f32
    %19 = vector.broadcast %cst_7 : f32 to vector<8x512xf32>
    %20 = tpu.iota {dimensions = array<i32: 0>} : vector<512x256xi32>
    %21 = vector.broadcast %18 : vector<1x256xi32> to vector<512x256xi32>
    %22 = arith.cmpi eq, %20, %21 : vector<512x256xi32>
    %23 = arith.extui %22 : vector<512x256xi1> to vector<512x256xi32>
    %24 = arith.sitofp %23 : vector<512x256xi32> to vector<512x256xf32>
    %25 = arith.truncf %24 : vector<512x256xf32> to vector<512x256xbf16>
    %26 = vector.extract_strided_slice %2 {offsets = [0, 0], sizes = [8, 256], strides = [1, 1]} : vector<11x256xf32> to vector<8x256xf32>
    %27 = arith.truncf %26 : vector<8x256xf32> to vector<8x256xbf16>
    %cst_8 = arith.constant dense<0.000000e+00> : vector<8x512xf32>
    %28 = tpu.matmul %27, %25, %cst_8 {dimension_numbers = #tpu.dot_dimension_numbers<[1], [1], [0], [0], [0, 0, 1, 0], [], []>} : vector<8x256xbf16>, vector<512x256xbf16>, vector<8x512xf32> -> vector<8x512xf32>
    %29 = arith.addf %19, %28 : vector<8x512xf32>
    %30 = vector.extract_strided_slice %29 {offsets = [7, 0], sizes = [1, 512], strides = [1, 1]} : vector<8x512xf32> to vector<1x512xf32>
    %cst_9 = arith.constant 1.000000e+00 : f32
    %31 = vector.broadcast %cst_9 : f32 to vector<1x512xf32>
    %32 = arith.maximumf %30, %31 : vector<1x512xf32>
    %33 = tpu.reciprocal %32 {approx = true} : vector<1x512xf32> -> vector<1x512xf32>
    %34 = vector.extract_strided_slice %29 {offsets = [0, 0], sizes = [7, 512], strides = [1, 1]} : vector<8x512xf32> to vector<7x512xf32>
    %35 = vector.broadcast %33 : vector<1x512xf32> to vector<7x512xf32>
    %36 = arith.mulf %34, %35 : vector<7x512xf32>
    %cst_10 = arith.constant 5.000000e-01 : f32
    %37 = vector.broadcast %cst_10 : f32 to vector<1x512xf32>
    %38 = arith.cmpf ogt, %30, %37 : vector<1x512xf32>
    %39 = arith.extui %38 : vector<1x512xi1> to vector<1x512xi32>
    %40 = arith.sitofp %39 : vector<1x512xi32> to vector<1x512xf32>
    %c0_11 = arith.constant 0 : index
    %c0_12 = arith.constant 0 : index
    %c0_13 = arith.constant 0 : index
    %41 = vector.load %arg7[%c0_11, %c0_12, %c0_13] : memref<2x11x512xf32, #tpu.memory_space<vmem>>, vector<1x7x512xf32>
    %42 = vector.shape_cast %41 : vector<1x7x512xf32> to vector<7x512xf32>
    %43 = vector.shape_cast %36 : vector<7x512xf32> to vector<1x7x512xf32>
    tpu.vector_store %arg7[%c0_11, %c0_12, %c0_13], %43 {strides = array<i32>} : memref<2x11x512xf32, #tpu.memory_space<vmem>>, vector<1x7x512xf32>,
    %c0_14 = arith.constant 0 : index
    %c0_15 = arith.constant 0 : index
    %44 = vector.load %arg3[%c0_14, %c0_15] : memref<3x512xf32, #tpu.memory_space<vmem>>, vector<3x512xf32>
    %c0_16 = arith.constant 0 : index
    %c7 = arith.constant 7 : index
    %c0_17 = arith.constant 0 : index
    %45 = vector.load %arg7[%c0_16, %c7, %c0_17] : memref<2x11x512xf32, #tpu.memory_space<vmem>>, vector<1x3x512xf32>
    %46 = vector.shape_cast %45 : vector<1x3x512xf32> to vector<3x512xf32>
    %47 = vector.shape_cast %44 : vector<3x512xf32> to vector<1x3x512xf32>
    tpu.vector_store %arg7[%c0_16, %c7, %c0_17], %47 {strides = array<i32>} : memref<2x11x512xf32, #tpu.memory_space<vmem>>, vector<1x3x512xf32>,
    %c0_18 = arith.constant 0 : index
    %c10 = arith.constant 10 : index
    %c0_19 = arith.constant 0 : index
    %48 = vector.load %arg7[%c0_18, %c10, %c0_19] : memref<2x11x512xf32, #tpu.memory_space<vmem>>, vector<1x1x512xf32>
    %49 = vector.shape_cast %48 : vector<1x1x512xf32> to vector<1x512xf32>
    %50 = vector.shape_cast %40 : vector<1x512xf32> to vector<1x1x512xf32>
    tpu.vector_store %arg7[%c0_18, %c10, %c0_19], %50 {strides = array<i32>} : memref<2x11x512xf32, #tpu.memory_space<vmem>>, vector<1x1x512xf32>,
    %51 = vector.extract_strided_slice %0 {offsets = [0, 0], sizes = [11, 7], strides = [1, 1]} : vector<11x11xf32> to vector<11x7xf32>
    %cst_20 = arith.constant dense<0.000000e+00> : vector<11x512xf32>
    %52 = tpu.matmul %51, %36, %cst_20 {dimension_numbers = #tpu.dot_dimension_numbers<[1], [0], [0], [1], [0, 0, 1, 1], [], []>} : vector<11x7xf32>, vector<7x512xf32>, vector<11x512xf32> -> vector<11x512xf32>
    %53 = vector.extract_strided_slice %0 {offsets = [0, 10], sizes = [11, 1], strides = [1, 1]} : vector<11x11xf32> to vector<11x1xf32>
    %54 = vector.broadcast %53 : vector<11x1xf32> to vector<11x512xf32>
    %55 = vector.broadcast %40 : vector<1x512xf32> to vector<11x512xf32>
    %56 = arith.mulf %54, %55 : vector<11x512xf32>
    %57 = arith.addf %52, %56 : vector<11x512xf32>
    %c0_21 = arith.constant 0 : index
    %c0_22 = arith.constant 0 : index
    %58 = vector.load %arg6[%c0_21, %c0_22] : memref<11x512xf32, #tpu.memory_space<vmem>>, vector<11x512xf32>
    %59 = arith.addf %57, %58 : vector<11x512xf32>
    %c0_23 = arith.constant 0 : index
    %c0_24 = arith.constant 0 : index
    %c0_25 = arith.constant 0 : index
    %60 = vector.load %arg2[%c0_23, %c0_24, %c0_25] : memref<2x1x5xf32, #tpu.memory_space<vmem>>, vector<1x1x5xf32>
    %61 = vector.shape_cast %60 : vector<1x1x5xf32> to vector<1x5xf32>
    %c0_26 = arith.constant 0 : index
    %c0_27 = arith.constant 0 : index
    %62 = vector.load %arg5[%c0_26, %c0_27] : memref<11x5xf32, #tpu.memory_space<vmem>>, vector<11x5xf32>
    %63 = vector.broadcast %61 : vector<1x5xf32> to vector<11x5xf32>
    %64 = arith.mulf %62, %63 : vector<11x5xf32>
    %cst_28 = arith.constant dense<0.000000e+00> : vector<11xf32>
    %65 = vector.multi_reduction <add>, %64, %cst_28 [1] : vector<11x5xf32> to vector<11xf32>
    %66 = vector.shape_cast %65 : vector<11xf32> to vector<11x1xf32>
    %67 = vector.extract_strided_slice %59 {offsets = [0, 0], sizes = [1, 512], strides = [1, 1]} : vector<11x512xf32> to vector<1x512xf32>
    %68 = vector.extract_strided_slice %66 {offsets = [0, 0], sizes = [1, 1], strides = [1, 1]} : vector<11x1xf32> to vector<1x1xf32>
    %69 = vector.broadcast %68 : vector<1x1xf32> to vector<1x512xf32>
    %70 = arith.addf %67, %69 : vector<1x512xf32>
    %c0_29 = arith.constant 0 : index
    %c0_30 = arith.constant 0 : index
    %c0_31 = arith.constant 0 : index
    %71 = vector.load %arg8[%c0_29, %c0_30, %c0_31] : memref<2x1x512xf32, #tpu.memory_space<vmem>>, vector<1x1x512xf32>
    %72 = vector.shape_cast %71 : vector<1x1x512xf32> to vector<1x512xf32>
    %73 = vector.shape_cast %70 : vector<1x512xf32> to vector<1x1x512xf32>
    tpu.vector_store %arg8[%c0_29, %c0_30, %c0_31], %73 {strides = array<i32>} : memref<2x1x512xf32, #tpu.memory_space<vmem>>, vector<1x1x512xf32>,
    %74 = vector.extract_strided_slice %59 {offsets = [1, 0], sizes = [10, 512], strides = [1, 1]} : vector<11x512xf32> to vector<10x512xf32>
    %cst_32 = arith.constant dense<0.000000e+00> : vector<10xf32>
    %75 = vector.multi_reduction <add>, %74, %cst_32 [1] : vector<10x512xf32> to vector<10xf32>
    %76 = vector.shape_cast %75 : vector<10xf32> to vector<10x1xf32>
    %cst_33 = arith.constant 0.001953125 : f32
    %77 = vector.broadcast %cst_33 : f32 to vector<10x1xf32>
    %78 = arith.mulf %76, %77 : vector<10x1xf32>
    %79 = vector.extract_strided_slice %66 {offsets = [1, 0], sizes = [10, 1], strides = [1, 1]} : vector<11x1xf32> to vector<10x1xf32>
    %80 = arith.addf %78, %79 : vector<10x1xf32>
    %c0_34 = arith.constant 0 : index
    %c0_35 = arith.constant 0 : index
    %c0_36 = arith.constant 0 : index
    %81 = vector.load %arg9[%c0_34, %c0_35, %c0_36] : memref<2x10x1xf32, #tpu.memory_space<vmem>>, vector<1x10x1xf32>
    %82 = vector.shape_cast %81 : vector<1x10x1xf32> to vector<10x1xf32>
    %83 = vector.shape_cast %80 : vector<10x1xf32> to vector<1x10x1xf32>
    tpu.vector_store %arg9[%c0_34, %c0_35, %c0_36], %83 {strides = array<i32>} : memref<2x10x1xf32, #tpu.memory_space<vmem>>, vector<1x10x1xf32>,
    %c1 = arith.constant 1 : index
    %c0_37 = arith.constant 0 : index
    %c0_38 = arith.constant 0 : index
    %84 = vector.load %arg1[%c1, %c0_37, %c0_38] : memref<2x11x256xf32, #tpu.memory_space<vmem>>, vector<1x11x256xf32>
    %85 = vector.shape_cast %84 : vector<1x11x256xf32> to vector<11x256xf32>
    %86 = vector.extract_strided_slice %85 {offsets = [8, 0], sizes = [3, 256], strides = [1, 1]} : vector<11x256xf32> to vector<3x256xf32>
    %87 = math.floor %86 : vector<3x256xf32>
    %cst_39 = arith.constant 0.000000e+00 : f32
    %cst_40 = arith.constant 7.000000e+00 : f32
    %88 = vector.broadcast %cst_39 : f32 to vector<3x256xf32>
    %89 = arith.maximumf %88, %87 : vector<3x256xf32>
    %90 = vector.broadcast %cst_40 : f32 to vector<3x256xf32>
    %91 = arith.minimumf %90, %89 : vector<3x256xf32>
    %92 = vector.extract_strided_slice %91 {offsets = [0, 0], sizes = [1, 256], strides = [1, 1]} : vector<3x256xf32> to vector<1x256xf32>
    %cst_41 = arith.constant 6.400000e+01 : f32
    %93 = vector.broadcast %cst_41 : f32 to vector<1x256xf32>
    %94 = arith.mulf %92, %93 : vector<1x256xf32>
    %95 = vector.extract_strided_slice %91 {offsets = [1, 0], sizes = [1, 256], strides = [1, 1]} : vector<3x256xf32> to vector<1x256xf32>
    %cst_42 = arith.constant 8.000000e+00 : f32
    %96 = vector.broadcast %cst_42 : f32 to vector<1x256xf32>
    %97 = arith.mulf %95, %96 : vector<1x256xf32>
    %98 = arith.addf %94, %97 : vector<1x256xf32>
    %99 = vector.extract_strided_slice %91 {offsets = [2, 0], sizes = [1, 256], strides = [1, 1]} : vector<3x256xf32> to vector<1x256xf32>
    %100 = arith.addf %98, %99 : vector<1x256xf32>
    %101 = arith.fptosi %100 : vector<1x256xf32> to vector<1x256xi32>
    %cst_43 = arith.constant 0.000000e+00 : f32
    %102 = vector.broadcast %cst_43 : f32 to vector<8x512xf32>
    %103 = tpu.iota {dimensions = array<i32: 0>} : vector<512x256xi32>
    %104 = vector.broadcast %101 : vector<1x256xi32> to vector<512x256xi32>
    %105 = arith.cmpi eq, %103, %104 : vector<512x256xi32>
    %106 = arith.extui %105 : vector<512x256xi1> to vector<512x256xi32>
    %107 = arith.sitofp %106 : vector<512x256xi32> to vector<512x256xf32>
    %108 = arith.truncf %107 : vector<512x256xf32> to vector<512x256xbf16>
    %109 = vector.extract_strided_slice %85 {offsets = [0, 0], sizes = [8, 256], strides = [1, 1]} : vector<11x256xf32> to vector<8x256xf32>
    %110 = arith.truncf %109 : vector<8x256xf32> to vector<8x256xbf16>
    %cst_44 = arith.constant dense<0.000000e+00> : vector<8x512xf32>
    %111 = tpu.matmul %110, %108, %cst_44 {dimension_numbers = #tpu.dot_dimension_numbers<[1], [1], [0], [0], [0, 0, 1, 0], [], []>} : vector<8x256xbf16>, vector<512x256xbf16>, vector<8x512xf32> -> vector<8x512xf32>
    %112 = arith.addf %102, %111 : vector<8x512xf32>
    %113 = vector.extract_strided_slice %112 {offsets = [7, 0], sizes = [1, 512], strides = [1, 1]} : vector<8x512xf32> to vector<1x512xf32>
    %cst_45 = arith.constant 1.000000e+00 : f32
    %114 = vector.broadcast %cst_45 : f32 to vector<1x512xf32>
    %115 = arith.maximumf %113, %114 : vector<1x512xf32>
    %116 = tpu.reciprocal %115 {approx = true} : vector<1x512xf32> -> vector<1x512xf32>
    %117 = vector.extract_strided_slice %112 {offsets = [0, 0], sizes = [7, 512], strides = [1, 1]} : vector<8x512xf32> to vector<7x512xf32>
    %118 = vector.broadcast %116 : vector<1x512xf32> to vector<7x512xf32>
    %119 = arith.mulf %117, %118 : vector<7x512xf32>
    %cst_46 = arith.constant 5.000000e-01 : f32
    %120 = vector.broadcast %cst_46 : f32 to vector<1x512xf32>
    %121 = arith.cmpf ogt, %113, %120 : vector<1x512xf32>
    %122 = arith.extui %121 : vector<1x512xi1> to vector<1x512xi32>
    %123 = arith.sitofp %122 : vector<1x512xi32> to vector<1x512xf32>
    %c1_47 = arith.constant 1 : index
    %c0_48 = arith.constant 0 : index
    %c0_49 = arith.constant 0 : index
    %124 = vector.load %arg7[%c1_47, %c0_48, %c0_49] : memref<2x11x512xf32, #tpu.memory_space<vmem>>, vector<1x7x512xf32>
    %125 = vector.shape_cast %124 : vector<1x7x512xf32> to vector<7x512xf32>
    %126 = vector.shape_cast %119 : vector<7x512xf32> to vector<1x7x512xf32>
    tpu.vector_store %arg7[%c1_47, %c0_48, %c0_49], %126 {strides = array<i32>} : memref<2x11x512xf32, #tpu.memory_space<vmem>>, vector<1x7x512xf32>,
    %c0_50 = arith.constant 0 : index
    %c0_51 = arith.constant 0 : index
    %127 = vector.load %arg3[%c0_50, %c0_51] : memref<3x512xf32, #tpu.memory_space<vmem>>, vector<3x512xf32>
    %c1_52 = arith.constant 1 : index
    %c7_53 = arith.constant 7 : index
    %c0_54 = arith.constant 0 : index
    %128 = vector.load %arg7[%c1_52, %c7_53, %c0_54] : memref<2x11x512xf32, #tpu.memory_space<vmem>>, vector<1x3x512xf32>
    %129 = vector.shape_cast %128 : vector<1x3x512xf32> to vector<3x512xf32>
    %130 = vector.shape_cast %127 : vector<3x512xf32> to vector<1x3x512xf32>
    tpu.vector_store %arg7[%c1_52, %c7_53, %c0_54], %130 {strides = array<i32>} : memref<2x11x512xf32, #tpu.memory_space<vmem>>, vector<1x3x512xf32>,
    %c1_55 = arith.constant 1 : index
    %c10_56 = arith.constant 10 : index
    %c0_57 = arith.constant 0 : index
    %131 = vector.load %arg7[%c1_55, %c10_56, %c0_57] : memref<2x11x512xf32, #tpu.memory_space<vmem>>, vector<1x1x512xf32>
    %132 = vector.shape_cast %131 : vector<1x1x512xf32> to vector<1x512xf32>
    %133 = vector.shape_cast %123 : vector<1x512xf32> to vector<1x1x512xf32>
    tpu.vector_store %arg7[%c1_55, %c10_56, %c0_57], %133 {strides = array<i32>} : memref<2x11x512xf32, #tpu.memory_space<vmem>>, vector<1x1x512xf32>,
    %134 = vector.extract_strided_slice %0 {offsets = [0, 0], sizes = [11, 7], strides = [1, 1]} : vector<11x11xf32> to vector<11x7xf32>
    %cst_58 = arith.constant dense<0.000000e+00> : vector<11x512xf32>
    %135 = tpu.matmul %134, %119, %cst_58 {dimension_numbers = #tpu.dot_dimension_numbers<[1], [0], [0], [1], [0, 0, 1, 1], [], []>} : vector<11x7xf32>, vector<7x512xf32>, vector<11x512xf32> -> vector<11x512xf32>
    %136 = vector.extract_strided_slice %0 {offsets = [0, 10], sizes = [11, 1], strides = [1, 1]} : vector<11x11xf32> to vector<11x1xf32>
    %137 = vector.broadcast %136 : vector<11x1xf32> to vector<11x512xf32>
    %138 = vector.broadcast %123 : vector<1x512xf32> to vector<11x512xf32>
    %139 = arith.mulf %137, %138 : vector<11x512xf32>
    %140 = arith.addf %135, %139 : vector<11x512xf32>
    %c0_59 = arith.constant 0 : index
    %c0_60 = arith.constant 0 : index
    %141 = vector.load %arg6[%c0_59, %c0_60] : memref<11x512xf32, #tpu.memory_space<vmem>>, vector<11x512xf32>
    %142 = arith.addf %140, %141 : vector<11x512xf32>
    %c1_61 = arith.constant 1 : index
    %c0_62 = arith.constant 0 : index
    %c0_63 = arith.constant 0 : index
    %143 = vector.load %arg2[%c1_61, %c0_62, %c0_63] : memref<2x1x5xf32, #tpu.memory_space<vmem>>, vector<1x1x5xf32>
    %144 = vector.shape_cast %143 : vector<1x1x5xf32> to vector<1x5xf32>
    %c0_64 = arith.constant 0 : index
    %c0_65 = arith.constant 0 : index
    %145 = vector.load %arg5[%c0_64, %c0_65] : memref<11x5xf32, #tpu.memory_space<vmem>>, vector<11x5xf32>
    %146 = vector.broadcast %144 : vector<1x5xf32> to vector<11x5xf32>
    %147 = arith.mulf %145, %146 : vector<11x5xf32>
    %cst_66 = arith.constant dense<0.000000e+00> : vector<11xf32>
    %148 = vector.multi_reduction <add>, %147, %cst_66 [1] : vector<11x5xf32> to vector<11xf32>
    %149 = vector.shape_cast %148 : vector<11xf32> to vector<11x1xf32>
    %150 = vector.extract_strided_slice %142 {offsets = [0, 0], sizes = [1, 512], strides = [1, 1]} : vector<11x512xf32> to vector<1x512xf32>
    %151 = vector.extract_strided_slice %149 {offsets = [0, 0], sizes = [1, 1], strides = [1, 1]} : vector<11x1xf32> to vector<1x1xf32>
    %152 = vector.broadcast %151 : vector<1x1xf32> to vector<1x512xf32>
    %153 = arith.addf %150, %152 : vector<1x512xf32>
    %c1_67 = arith.constant 1 : index
    %c0_68 = arith.constant 0 : index
    %c0_69 = arith.constant 0 : index
    %154 = vector.load %arg8[%c1_67, %c0_68, %c0_69] : memref<2x1x512xf32, #tpu.memory_space<vmem>>, vector<1x1x512xf32>
    %155 = vector.shape_cast %154 : vector<1x1x512xf32> to vector<1x512xf32>
    %156 = vector.shape_cast %153 : vector<1x512xf32> to vector<1x1x512xf32>
    tpu.vector_store %arg8[%c1_67, %c0_68, %c0_69], %156 {strides = array<i32>} : memref<2x1x512xf32, #tpu.memory_space<vmem>>, vector<1x1x512xf32>,
    %157 = vector.extract_strided_slice %142 {offsets = [1, 0], sizes = [10, 512], strides = [1, 1]} : vector<11x512xf32> to vector<10x512xf32>
    %cst_70 = arith.constant dense<0.000000e+00> : vector<10xf32>
    %158 = vector.multi_reduction <add>, %157, %cst_70 [1] : vector<10x512xf32> to vector<10xf32>
    %159 = vector.shape_cast %158 : vector<10xf32> to vector<10x1xf32>
    %cst_71 = arith.constant 0.001953125 : f32
    %160 = vector.broadcast %cst_71 : f32 to vector<10x1xf32>
    %161 = arith.mulf %159, %160 : vector<10x1xf32>
    %162 = vector.extract_strided_slice %149 {offsets = [1, 0], sizes = [10, 1], strides = [1, 1]} : vector<11x1xf32> to vector<10x1xf32>
    %163 = arith.addf %161, %162 : vector<10x1xf32>
    %c1_72 = arith.constant 1 : index
    %c0_73 = arith.constant 0 : index
    %c0_74 = arith.constant 0 : index
    %164 = vector.load %arg9[%c1_72, %c0_73, %c0_74] : memref<2x10x1xf32, #tpu.memory_space<vmem>>, vector<1x10x1xf32>
    %165 = vector.shape_cast %164 : vector<1x10x1xf32> to vector<10x1xf32>
    %166 = vector.shape_cast %163 : vector<10x1xf32> to vector<1x10x1xf32>
    tpu.vector_store %arg9[%c1_72, %c0_73, %c0_74], %166 {strides = array<i32>} : memref<2x10x1xf32, #tpu.memory_space<vmem>>, vector<1x10x1xf32>,
    return
  }
  func.func @transform_0(%arg0: i32) -> (i32, i32, i32) {
    %c0_i32 = arith.constant 0 : i32
    %c0_i32_0 = arith.constant 0 : i32
    %c0_i32_1 = arith.constant 0 : i32
    return %arg0, %c0_i32, %c0_i32_0 : i32, i32, i32
  }
  func.func @transform_1(%arg0: i32) -> (i32, i32, i32) {
    %c0_i32 = arith.constant 0 : i32
    %c0_i32_0 = arith.constant 0 : i32
    %c0_i32_1 = arith.constant 0 : i32
    return %arg0, %c0_i32, %c0_i32_0 : i32, i32, i32
  }
  func.func @transform_2(%arg0: i32) -> (i32, i32) {
    %c0_i32 = arith.constant 0 : i32
    %c0_i32_0 = arith.constant 0 : i32
    %c0_i32_1 = arith.constant 0 : i32
    return %c0_i32, %c0_i32_0 : i32, i32
  }
  func.func @transform_3(%arg0: i32) -> (i32, i32) {
    %c0_i32 = arith.constant 0 : i32
    %c0_i32_0 = arith.constant 0 : i32
    %c0_i32_1 = arith.constant 0 : i32
    return %c0_i32, %c0_i32_0 : i32, i32
  }
  func.func @transform_4(%arg0: i32) -> (i32, i32) {
    %c0_i32 = arith.constant 0 : i32
    %c0_i32_0 = arith.constant 0 : i32
    %c0_i32_1 = arith.constant 0 : i32
    return %c0_i32, %c0_i32_0 : i32, i32
  }
  func.func @transform_5(%arg0: i32) -> (i32, i32) {
    %c0_i32 = arith.constant 0 : i32
    %c0_i32_0 = arith.constant 0 : i32
    %c0_i32_1 = arith.constant 0 : i32
    return %c0_i32, %c0_i32_0 : i32, i32
  }
  func.func @transform_6(%arg0: i32) -> (i32, i32, i32) {
    %c0_i32 = arith.constant 0 : i32
    %c0_i32_0 = arith.constant 0 : i32
    %c0_i32_1 = arith.constant 0 : i32
    return %arg0, %c0_i32, %c0_i32_0 : i32, i32, i32
  }
  func.func @transform_7(%arg0: i32) -> (i32, i32, i32) {
    %c0_i32 = arith.constant 0 : i32
    %c0_i32_0 = arith.constant 0 : i32
    %c0_i32_1 = arith.constant 0 : i32
    return %arg0, %c0_i32, %c0_i32_0 : i32, i32, i32
  }
  func.func @transform_8(%arg0: i32) -> (i32, i32, i32) {
    %c0_i32 = arith.constant 0 : i32
    %c0_i32_0 = arith.constant 0 : i32
    %c0_i32_1 = arith.constant 0 : i32
    return %arg0, %c0_i32, %c0_i32_0 : i32, i32, i32
  }
}

</mosaic_0001>

<bundles_post_ra>
// kernel: tpu_custom_call.1
= control target key start
LH: loop header
LB: loop body
LE: loop exit
PB: predicated region body
PF: predicated region fallthrough
CT: control target
= control target key end

     0   :  { %s3949_s0 = inlined_call_operand.vmem [shape: f32[2,11,256], index: 0, kind: input, shape index: {}]   ;;  %s3950_s1 = inlined_call_operand.vmem [shape: f32[2,1,5], index: 1, kind: input, shape index: {}]   ;;  %s3951_s2 = inlined_call_operand.vmem [shape: f32[3,512], index: 2, kind: input, shape index: {}]   ;;  %s3952_s3 = inlined_call_operand.vmem [shape: f32[11,11], index: 3, kind: input, shape index: {}]   ;;  %s3953_s4 = inlined_call_operand.vmem [shape: f32[11,5], index: 4, kind: input, shape index: {}]   ;;  %s3954_s5 = inlined_call_operand.vmem [shape: f32[11,512], index: 5, kind: input, shape index: {}]   ;;  %s3955_s6 = inlined_call_operand.vmem [shape: f32[2,11,512], index: 6, kind: output, shape index: {0}]   ;;  %s3956_s7 = inlined_call_operand.hbm [shape: f32[2,1,512], index: 7, kind: output, shape index: {1}]   ;;  %s3957_s8 = inlined_call_operand.vmem [shape: f32[2,10,1], index: 8, kind: output, shape index: {2}]  }
   0x1   :  { %v32_v0 = vld [vmem:[%s3949_s0 + $0x18] sm:$0x7]  ;;  %v31_v1 = vld [vmem:[%s3949_s0 + $0x10] sm:$0x7] }
   0x2   :  { %v34_v2 = vfloor.f32 %v32_v0  ;;  %v33_v3 = vfloor.f32 %v31_v1 }
   0x3   :  { %14 = vsyncpa [#allocation3], 0  ;;  %v3958_v10 = vlaneseq  ;;  %v3963_v36 = vmov 1.0|1.0   ;;  %v30_v53 = vld [vmem:[%s3949_s0 + $0x8] sm:$0xff]  ;;  %v2945_v59 = vld [vmem:[%s3952_s3] sm:$0xff] }
   0x4   :  { %v36_v4 = vmax.f32 %v34_v2, 0.0  ;;  %v35_v5 = vmax.f32 %v33_v3, 0.0  ;;  %v583_v56 = vpack.c.bf16 %v30_v53, %v30_v53  ;;  %v2676_v60 = vmov 10   ;;  %v2964_v61 = vld [vmem:[%s3952_s3 + $0x8] sm:$0x7] }
   0x5   :  { %v2734_v18 = vshrl.u32 %v3958_v10, 7  ;;  %2628 = vset.pattern.permute.xlu0 %v2676_v60 }
   0x6   :  { %v38_v6 = vmin.f32 %v36_v4, 7.0  ;;  %v37_v7 = vmin.f32 %v35_v5, 7.0  ;;  %616 = vmatprep.mubr.bf16.mxu0 %v583_v56  ;;  %657 = vmatprep.mubr.bf16.mxu1 %v583_v56 }
   0x7   :  { %v2737_v23 = vsub.s32 0, %v2734_v18  ;;  %v2740_v26 = vadd.s32 8, %v2734_v18  ;;  %v2743_v27 = vadd.s32 256, %v2734_v18  ;;  %v2746_v28 = vadd.s32 264, %v2734_v18  ;;  %771 = vperm.xlu0 %2628, %v2945_v59  }
   0x8   :  { %v40_v8 = vmul.f32 64.0, %v38_v6  ;;  %v42_v9 = vmul.f32 8.0, %v38_v6  ;;  %v39_v11 = vmul.f32 64.0, %v37_v7  ;;  %v41_v12 = vmul.f32 8.0, %v37_v7 }
   0x9   :  { %v54_v14 = vrot.slane %v38_v6, 2  ;;  %v53_v16 = vrot.slane %v37_v7, 2  ;;  %v2752_v31 = vadd.s32 16, %v2734_v18  ;;  %v2755_v32 = vadd.s32 24, %v2734_v18 }
   0xa   :  { %v46_v13 = vrot.slane %v42_v9, 1  ;;  %v45_v15 = vrot.slane %v41_v12, 1  ;;  %v2761_v34 = vadd.s32 272, %v2734_v18  ;;  %v2764_v35 = vadd.s32 280, %v2734_v18 }
   0xb   :  { %v2793_v37 = vadd.s32 32, %v2734_v18  ;;  %v2796_v38 = vadd.s32 40, %v2734_v18  ;;  %v2800_v39 = vadd.s32 288, %v2734_v18  ;;  %v2803_v40 = vadd.s32 296, %v2734_v18  ;;  %776 = vperm.xlu0 %2628, %v2964_v61  }
   0xc   :  { %v50_v17 = vadd.f32 %v46_v13, %v40_v8  ;;  %v49_v19 = vadd.f32 %v45_v15, %v39_v11  ;;  %v2825_v41 = vadd.s32 48, %v2734_v18  ;;  %v2828_v42 = vadd.s32 56, %v2734_v18 }
   0xd   :  { %v2832_v43 = vadd.s32 304, %v2734_v18  ;;  %v2835_v44 = vadd.s32 312, %v2734_v18  ;;  %v2857_v45 = vadd.s32 64, %v2734_v18  ;;  %v2860_v46 = vadd.s32 72, %v2734_v18 }
   0xe   :  { %v58_v20 = vadd.f32 %v54_v14, %v50_v17  ;;  %v57_v21 = vadd.f32 %v53_v16, %v49_v19  ;;  %v2864_v47 = vadd.s32 320, %v2734_v18  ;;  %v2867_v48 = vadd.s32 328, %v2734_v18 }
   0xf   :  { %v2889_v49 = vadd.s32 80, %v2734_v18  ;;  %v2892_v50 = vadd.s32 88, %v2734_v18  ;;  %v2896_v51 = vadd.s32 336, %v2734_v18  ;;  %v2899_v52 = vadd.s32 344, %v2734_v18 }
  0x10   :  { %v2615_v22 = vtrunc.f32 %v58_v20  ;;  %v2613_v24 = vtrunc.f32 %v57_v21  ;;  %v2924_v54 = vadd.s32 96, %v2734_v18  ;;  %v2927_v55 = vadd.s32 104, %v2734_v18 }
  0x11   :  { %v2931_v57 = vadd.s32 352, %v2734_v18  ;;  %v2934_v58 = vadd.s32 360, %v2734_v18  ;;  %v2967_v62 = vadd.s32 112, %v2734_v18  ;;  %v2970_v63 = vadd.s32 120, %v2734_v18 }
  0x12   :  { %v2616_v25 = vcvt.f32.s32 %v2615_v22  ;;  %v2614_v29 = vcvt.f32.s32 %v2613_v24  ;;  %v2974_v0 = vadd.s32 368, %v2734_v18  ;;  %v2977_v1 = vadd.s32 376, %v2734_v18 }
  0x13   :  { %v3000_v2 = vadd.s32 128, %v2734_v18  ;;  %v3003_v3 = vadd.s32 136, %v2734_v18  ;;  %v3007_v4 = vadd.s32 384, %v2734_v18  ;;  %v3010_v5 = vadd.s32 392, %v2734_v18 }
  0x14   :  { %v2749_v30 = vrot.slane %v2616_v25, %v2737_v23  ;;  %v2758_v33 = vrot.slane %v2614_v29, %v2737_v23  ;;  %v3032_v6 = vadd.s32 144, %v2734_v18  ;;  %v3035_v7 = vadd.s32 152, %v2734_v18 }
  0x15   :  { %4026 = vst [vmem:[#allocation5_spill] sm:$0xff] %v3010_v5  ;;  %v3039_v8 = vadd.s32 400, %v2734_v18  ;;  %v3042_v9 = vadd.s32 408, %v2734_v18  ;;  %v3064_v11 = vadd.s32 160, %v2734_v18  ;;  %v3067_v12 = vadd.s32 168, %v2734_v18 }
  0x16   :  { %vm135_vm0 = vcmp.eq.s32.totalorder %v2734_v18, %v2749_v30  ;;  %vm137_vm1 = vcmp.eq.s32.totalorder %v2740_v26, %v2749_v30  ;;  %vm199_vm2 = vcmp.eq.s32.totalorder %v2743_v27, %v2749_v30  ;;  %vm201_vm3 = vcmp.eq.s32.totalorder %v2746_v28, %v2749_v30  ;;  %4027 = vst [vmem:[#allocation6_spill] sm:$0xff] %v3032_v6 }
  0x17   :  { %vm2182_vm4 = vmpackc.low %vm137_vm1, %vm135_vm0  ;;  %vm134_vm5 = vcmp.eq.s32.totalorder %v2734_v18, %v2758_v33  ;;  %vm136_vm6 = vcmp.eq.s32.totalorder %v2740_v26, %v2758_v33  ;;  %vm198_vm7 = vcmp.eq.s32.totalorder %v2743_v27, %v2758_v33  ;;  %vm200_vm8 = vcmp.eq.s32.totalorder %v2746_v28, %v2758_v33  ;;  %4028 = vst [vmem:[#allocation7_spill] sm:$0xff] %v3035_v7 }
  0x18   :  { %2183 = vmatprep.subr.msk.bf16.mxu0 %vm2182_vm4, %v3963_v36  ;;  %vm2246_vm9 = vmpackc.low %vm201_vm3, %vm199_vm2  ;;  %vm139_vm10 = vcmp.eq.s32.totalorder %v2752_v31, %v2749_v30  ;;  %vm141_vm11 = vcmp.eq.s32.totalorder %v2755_v32, %v2749_v30  ;;  %vm203_vm13 = vcmp.eq.s32.totalorder %v2761_v34, %v2749_v30  ;;  %vm205_vm14 = vcmp.eq.s32.totalorder %v2764_v35, %v2749_v30 }
  0x19   :  { %2247 = vmatprep.subr.msk.bf16.mxu1 %vm2246_vm9, %v3963_v36  ;;  %vm2184_vm12 = vmpackc.low %vm136_vm6, %vm134_vm5  ;;  %vm138_vm1 = vcmp.eq.s32.totalorder %v2752_v31, %v2758_v33  ;;  %vm140_vm2 = vcmp.eq.s32.totalorder %v2755_v32, %v2758_v33  ;;  %vm202_vm4 = vcmp.eq.s32.totalorder %v2761_v34, %v2758_v33  ;;  %vm204_vm5 = vcmp.eq.s32.totalorder %v2764_v35, %v2758_v33 }
  0x1a   :  { %2185 = vmatpush1.bf16.xpose.msk.msra.mxu0 %vm2184_vm12, %v3963_v36  ;;  %vm2248_vm15 = vmpackc.low %vm200_vm8, %vm198_vm7  ;;  %vm143_vm6 = vcmp.eq.s32.totalorder %v2793_v37, %v2749_v30  ;;  %vm145_vm7 = vcmp.eq.s32.totalorder %v2796_v38, %v2749_v30  ;;  %vm207_vm9 = vcmp.eq.s32.totalorder %v2800_v39, %v2749_v30  ;;  %4029 = vst [vmem:[#allocation8_spill] sm:$0xff] %v3039_v8  ;;  %v3071_v13 = vadd.s32 416, %v2734_v18 }
  0x1b   :  { %2249 = vmatpush1.bf16.xpose.msk.msra.mxu1 %vm2248_vm15, %v3963_v36  ;;  %vm2186_vm0 = vmpackc.low %vm141_vm11, %vm139_vm10  ;;  %vm209_vm10 = vcmp.eq.s32.totalorder %v2803_v40, %v2749_v30  ;;  %vm144_vm15 = vcmp.eq.s32.totalorder %v2796_v38, %v2758_v33  ;;  %4030 = vst [vmem:[#allocation9_spill] sm:$0xff] %v3042_v9  ;;  %v3074_v14 = vadd.s32 424, %v2734_v18  ;;  %v3096_v15 = vadd.s32 176, %v2734_v18 }
  0x1c   :  { %2187 = vmatprep.subr.msk.bf16.mxu0 %vm2186_vm0, %v3963_v36  ;;  %vm2250_vm3 = vmpackc.low %vm205_vm14, %vm203_vm13  ;;  %vm142_vm14 = vcmp.eq.s32.totalorder %v2793_v37, %v2758_v33  ;;  %vm206_vm0 = vcmp.eq.s32.totalorder %v2800_v39, %v2758_v33  ;;  %4031 = vst [vmem:[#allocation10_spill] sm:$0xff] %v3064_v11  ;;  %v3099_v16 = vadd.s32 184, %v2734_v18  ;;  %v3103_v17 = vadd.s32 432, %v2734_v18 }
  0x1d   :  { %2251 = vmatprep.subr.msk.bf16.mxu1 %vm2250_vm3, %v3963_v36  ;;  %vm2188_vm8 = vmpackc.low %vm140_vm2, %vm138_vm1  ;;  %vm208_vm1 = vcmp.eq.s32.totalorder %v2803_v40, %v2758_v33  ;;  %vm147_vm2 = vcmp.eq.s32.totalorder %v2825_v41, %v2749_v30  ;;  %vm149_vm3 = vcmp.eq.s32.totalorder %v2828_v42, %v2749_v30  ;;  %4032 = vst [vmem:[#allocation11_spill] sm:$0xff] %v3067_v12  ;;  %v3106_v19 = vadd.s32 440, %v2734_v18 }
  0x1e   :  { %vm2252_vm11 = vmpackc.low %vm204_vm5, %vm202_vm4  ;;  %vm211_vm5 = vcmp.eq.s32.totalorder %v2832_v43, %v2749_v30  ;;  %4033 = vst [vmem:[#allocation12_spill] sm:$0xff] %v3071_v13  ;;  %v3128_v20 = vadd.s32 192, %v2734_v18  ;;  %v3131_v21 = vadd.s32 200, %v2734_v18  ;;  %v3135_v22 = vadd.s32 448, %v2734_v18 }
  0x1f   :  { %vm2190_vm12 = vmpackc.low %vm145_vm7, %vm143_vm6  ;;  %vm213_vm6 = vcmp.eq.s32.totalorder %v2835_v44, %v2749_v30  ;;  %4034 = vst [vmem:[#allocation13_spill] sm:$0xff] %v3074_v14  ;;  %v3138_v24 = vadd.s32 456, %v2734_v18  ;;  %v3160_v25 = vadd.s32 208, %v2734_v18  ;;  %v3163_v29 = vadd.s32 216, %v2734_v18 }
  0x20   :  { %vm2254_vm13 = vmpackc.low %vm209_vm10, %vm207_vm9  ;;  %vm146_vm10 = vcmp.eq.s32.totalorder %v2825_v41, %v2758_v33  ;;  %4035 = vst [vmem:[#allocation14_spill] sm:$0xff] %v3096_v15  ;;  %v3167_v53 = vadd.s32 464, %v2734_v18  ;;  %v3170_v56 = vadd.s32 472, %v2734_v18  ;;  %v3192_v60 = vadd.s32 224, %v2734_v18 }
  0x21   :  { %vm2192_vm4 = vmpackc.low %vm144_vm15, %vm142_vm14  ;;  %vm151_vm14 = vcmp.eq.s32.totalorder %v2857_v45, %v2749_v30  ;;  %vm153_vm15 = vcmp.eq.s32.totalorder %v2860_v46, %v2749_v30  ;;  %4036 = vst [vmem:[#allocation15_spill] sm:$0xff] %v3099_v16  ;;  %v3195_v10 = vadd.s32 232, %v2734_v18 }
  0x22   :  { %2189 = vmatpush1.bf16.xpose.msk.msra.mxu0 %vm2188_vm8, %v3963_v36  ;;  %vm2256_vm7 = vmpackc.low %vm208_vm1, %vm206_vm0  ;;  %vm215_vm1 = vcmp.eq.s32.totalorder %v2864_v47, %v2749_v30  ;;  %4037 = vst [vmem:[#allocation16_spill] sm:$0xff] %v3103_v17 }
  0x23   :  { %2253 = vmatpush1.bf16.xpose.msk.msra.mxu1 %vm2252_vm11, %v3963_v36  ;;  %2191 = vmatprep.subr.msk.bf16.mxu0 %vm2190_vm12, %v3963_v36  ;;  %vm2194_vm8 = vmpackc.low %vm149_vm3, %vm147_vm2  ;;  %vm148_vm11 = vcmp.eq.s32.totalorder %v2828_v42, %v2758_v33  ;;  %vm210_vm12 = vcmp.eq.s32.totalorder %v2832_v43, %v2758_v33  ;;  %vm217_vm2 = vcmp.eq.s32.totalorder %v2867_v48, %v2749_v30 }
  0x24   :  { %2255 = vmatprep.subr.msk.bf16.mxu1 %vm2254_vm13, %v3963_v36  ;;  %vm2258_vm9 = vmpackc.low %vm213_vm6, %vm211_vm5  ;;  %vm212_vm13 = vcmp.eq.s32.totalorder %v2835_v44, %v2758_v33  ;;  %vm150_vm6 = vcmp.eq.s32.totalorder %v2857_v45, %v2758_v33  ;;  %4038 = vst [vmem:[#allocation17_spill] sm:$0xff] %v3106_v19 }
  0x25   :  { %vm2196_vm0 = vmpackc.low %vm148_vm11, %vm146_vm10  ;;  %vm155_vm10 = vcmp.eq.s32.totalorder %v2889_v49, %v2749_v30  ;;  %vm157_vm11 = vcmp.eq.s32.totalorder %v2892_v50, %v2749_v30  ;;  %4039 = vst [vmem:[#allocation18_spill] sm:$0xff] %v3128_v20 }
  0x26   :  { %vm2260_vm3 = vmpackc.low %vm212_vm13, %vm210_vm12  ;;  %vm219_vm13 = vcmp.eq.s32.totalorder %v2896_v51, %v2749_v30  ;;  %4040 = vst [vmem:[#allocation19_spill] sm:$0xff] %v3131_v21 }
  0x27   :  { %vm2262_vm5 = vmpackc.low %vm217_vm2, %vm215_vm1  ;;  %vm154_vm2 = vcmp.eq.s32.totalorder %v2889_v49, %v2758_v33  ;;  %4041 = vst [vmem:[#allocation20_spill] sm:$0xff] %v3135_v22 }
  0x28   :  { %4042 = vst [vmem:[#allocation21_spill] sm:$0xff] %v3138_v24  ;;  %4043 = vst [vmem:[#allocation22_spill] sm:$0xff] %v3160_v25 }
  0x29   :  { %4044 = vst [vmem:[#allocation23_spill] sm:$0xff] %v3163_v29  ;;  %4045 = vst [vmem:[#allocation24_spill] sm:$0xff] %v3167_v53 }
  0x2a   :  { %2193 = vmatpush1.bf16.xpose.msk.msra.mxu0 %vm2192_vm4, %v3963_v36  ;;  %vm2198_vm4 = vmpackc.low %vm153_vm15, %vm151_vm14  ;;  %vm221_vm14 = vcmp.eq.s32.totalorder %v2899_v52, %v2749_v30  ;;  %4046 = vst [vmem:[#allocation25_spill] sm:$0xff] %v3170_v56 }
  0x2b   :  { %2257 = vmatpush1.bf16.xpose.msk.msra.mxu1 %vm2256_vm7, %v3963_v36  ;;  %2195 = vmatprep.subr.msk.bf16.mxu0 %vm2194_vm8, %v3963_v36  ;;  %vm152_vm7 = vcmp.eq.s32.totalorder %v2860_v46, %v2758_v33  ;;  %vm214_vm8 = vcmp.eq.s32.totalorder %v2864_v47, %v2758_v33  ;;  %vm2266_vm1 = vmpackc.low %vm221_vm14, %vm219_vm13  ;;  %vm158_vm14 = vcmp.eq.s32.totalorder %v2924_v54, %v2758_v33 }
  0x2c   :  { %2259 = vmatprep.subr.msk.bf16.mxu1 %vm2258_vm9, %v3963_v36  ;;  %vm216_vm9 = vcmp.eq.s32.totalorder %v2867_v48, %v2758_v33  ;;  %vm2200_vm12 = vmpackc.low %vm152_vm7, %vm150_vm6  ;;  %vm159_vm6 = vcmp.eq.s32.totalorder %v2924_v54, %v2749_v30  ;;  %vm161_vm7 = vcmp.eq.s32.totalorder %v2927_v55, %v2749_v30  ;;  %4047 = vst [vmem:[#allocation26_spill] sm:$0xff] %v3192_v60 }
  0x2d   :  { %vm2264_vm15 = vmpackc.low %vm216_vm9, %vm214_vm8  ;;  %vm223_vm9 = vcmp.eq.s32.totalorder %v2931_v57, %v2749_v30  ;;  %4048 = vst [vmem:[#allocation27_spill] sm:$0xff] %v3195_v10 }
  0x32   :  { %2197 = vmatpush1.bf16.xpose.msk.msra.mxu0 %vm2196_vm0, %v3963_v36  ;;  %vm2202_vm0 = vmpackc.low %vm157_vm11, %vm155_vm10  ;;  %vm225_vm10 = vcmp.eq.s32.totalorder %v2934_v58, %v2749_v30 }
  0x33   :  { %2261 = vmatpush1.bf16.xpose.msk.msra.mxu1 %vm2260_vm3, %v3963_v36  ;;  %2199 = vmatprep.subr.msk.bf16.mxu0 %vm2198_vm4, %v3963_v36  ;;  %vm156_vm3 = vcmp.eq.s32.totalorder %v2892_v50, %v2758_v33  ;;  %vm218_vm4 = vcmp.eq.s32.totalorder %v2896_v51, %v2758_v33  ;;  %vm2270_vm13 = vmpackc.low %vm225_vm10, %vm223_vm9  ;;  %vm162_vm10 = vcmp.eq.s32.totalorder %v2967_v62, %v2758_v33 }
  0x34   :  { %2263 = vmatprep.subr.msk.bf16.mxu1 %vm2262_vm5, %v3963_v36  ;;  %vm220_vm5 = vcmp.eq.s32.totalorder %v2899_v52, %v2758_v33  ;;  %vm2204_vm8 = vmpackc.low %vm156_vm3, %vm154_vm2  ;;  %vm163_vm2 = vcmp.eq.s32.totalorder %v2967_v62, %v2749_v30  ;;  %vm165_vm3 = vcmp.eq.s32.totalorder %v2970_v63, %v2749_v30 }
  0x35   :  { %vm2268_vm11 = vmpackc.low %vm220_vm5, %vm218_vm4  ;;  %vm227_vm5 = vcmp.eq.s32.totalorder %v2974_v0, %v2749_v30 }
  0x3a   :  { %2201 = vmatpush1.bf16.xpose.msk.msra.mxu0 %vm2200_vm12, %v3963_v36  ;;  %vm2206_vm12 = vmpackc.low %vm161_vm7, %vm159_vm6  ;;  %vm229_vm6 = vcmp.eq.s32.totalorder %v2977_v1, %v2749_v30 }
  0x3b   :  { %2265 = vmatpush1.bf16.xpose.msk.msra.mxu1 %vm2264_vm15, %v3963_v36  ;;  %2203 = vmatprep.subr.msk.bf16.mxu0 %vm2202_vm0, %v3963_v36  ;;  %vm160_vm15 = vcmp.eq.s32.totalorder %v2927_v55, %v2758_v33  ;;  %vm222_vm0 = vcmp.eq.s32.totalorder %v2931_v57, %v2758_v33  ;;  %vm2274_vm9 = vmpackc.low %vm229_vm6, %vm227_vm5  ;;  %vm166_vm6 = vcmp.eq.s32.totalorder %v3000_v2, %v2758_v33 }
  0x3c   :  { %2267 = vmatprep.subr.msk.bf16.mxu1 %vm2266_vm1, %v3963_v36  ;;  %vm224_vm1 = vcmp.eq.s32.totalorder %v2934_v58, %v2758_v33  ;;  %vm2208_vm4 = vmpackc.low %vm160_vm15, %vm158_vm14  ;;  %vm167_vm14 = vcmp.eq.s32.totalorder %v3000_v2, %v2749_v30  ;;  %vm169_vm15 = vcmp.eq.s32.totalorder %v3003_v3, %v2749_v30 }
  0x3d   :  { %vm2272_vm7 = vmpackc.low %vm224_vm1, %vm222_vm0  ;;  %vm231_vm1 = vcmp.eq.s32.totalorder %v3007_v4, %v2749_v30 }
  0x42   :  { %2205 = vmatpush1.bf16.xpose.msk.msra.mxu0 %vm2204_vm8, %v3963_v36  ;;  %vm2210_vm8 = vmpackc.low %vm165_vm3, %vm163_vm2  ;;  %vm233_vm2 = vcmp.eq.s32.totalorder %v3010_v5, %v2749_v30 }
  0x43   :  { %2269 = vmatpush1.bf16.xpose.msk.msra.mxu1 %vm2268_vm11, %v3963_v36  ;;  %2207 = vmatprep.subr.msk.bf16.mxu0 %vm2206_vm12, %v3963_v36  ;;  %vm164_vm11 = vcmp.eq.s32.totalorder %v2970_v63, %v2758_v33  ;;  %vm226_vm12 = vcmp.eq.s32.totalorder %v2974_v0, %v2758_v33  ;;  %vm2278_vm5 = vmpackc.low %vm233_vm2, %vm231_vm1  ;;  %vm170_vm2 = vcmp.eq.s32.totalorder %v3032_v6, %v2758_v33 }
  0x44   :  { %2271 = vmatprep.subr.msk.bf16.mxu1 %vm2270_vm13, %v3963_v36  ;;  %vm228_vm13 = vcmp.eq.s32.totalorder %v2977_v1, %v2758_v33  ;;  %vm2212_vm0 = vmpackc.low %vm164_vm11, %vm162_vm10  ;;  %vm171_vm10 = vcmp.eq.s32.totalorder %v3032_v6, %v2749_v30  ;;  %vm173_vm11 = vcmp.eq.s32.totalorder %v3035_v7, %v2749_v30 }
  0x45   :  { %vm2276_vm3 = vmpackc.low %vm228_vm13, %vm226_vm12  ;;  %vm235_vm13 = vcmp.eq.s32.totalorder %v3039_v8, %v2749_v30 }
  0x4a   :  { %2209 = vmatpush1.bf16.xpose.msk.msra.mxu0 %vm2208_vm4, %v3963_v36  ;;  %vm2214_vm4 = vmpackc.low %vm169_vm15, %vm167_vm14  ;;  %vm237_vm14 = vcmp.eq.s32.totalorder %v3042_v9, %v2749_v30 }
  0x4b   :  { %2273 = vmatpush1.bf16.xpose.msk.msra.mxu1 %vm2272_vm7, %v3963_v36  ;;  %2211 = vmatprep.subr.msk.bf16.mxu0 %vm2210_vm8, %v3963_v36  ;;  %vm168_vm7 = vcmp.eq.s32.totalorder %v3003_v3, %v2758_v33  ;;  %vm230_vm8 = vcmp.eq.s32.totalorder %v3007_v4, %v2758_v33  ;;  %vm2282_vm1 = vmpackc.low %vm237_vm14, %vm235_vm13  ;;  %vm174_vm14 = vcmp.eq.s32.totalorder %v3064_v11, %v2758_v33 }
  0x4c   :  { %2275 = vmatprep.subr.msk.bf16.mxu1 %vm2274_vm9, %v3963_v36  ;;  %vm232_vm9 = vcmp.eq.s32.totalorder %v3010_v5, %v2758_v33  ;;  %vm2216_vm12 = vmpackc.low %vm168_vm7, %vm166_vm6  ;;  %vm175_vm6 = vcmp.eq.s32.totalorder %v3064_v11, %v2749_v30  ;;  %vm177_vm7 = vcmp.eq.s32.totalorder %v3067_v12, %v2749_v30 }
  0x4d   :  { %vm2280_vm15 = vmpackc.low %vm232_vm9, %vm230_vm8  ;;  %vm239_vm9 = vcmp.eq.s32.totalorder %v3071_v13, %v2749_v30 }
  0x52   :  { %2213 = vmatpush1.bf16.xpose.msk.msra.mxu0 %vm2212_vm0, %v3963_v36  ;;  %vm2218_vm0 = vmpackc.low %vm173_vm11, %vm171_vm10  ;;  %vm241_vm10 = vcmp.eq.s32.totalorder %v3074_v14, %v2749_v30 }
  0x53   :  { %2277 = vmatpush1.bf16.xpose.msk.msra.mxu1 %vm2276_vm3, %v3963_v36  ;;  %2215 = vmatprep.subr.msk.bf16.mxu0 %vm2214_vm4, %v3963_v36  ;;  %vm172_vm3 = vcmp.eq.s32.totalorder %v3035_v7, %v2758_v33  ;;  %vm234_vm4 = vcmp.eq.s32.totalorder %v3039_v8, %v2758_v33  ;;  %vm2286_vm13 = vmpackc.low %vm241_vm10, %vm239_vm9  ;;  %vm178_vm10 = vcmp.eq.s32.totalorder %v3096_v15, %v2758_v33 }
  0x54   :  { %2279 = vmatprep.subr.msk.bf16.mxu1 %vm2278_vm5, %v3963_v36  ;;  %vm236_vm5 = vcmp.eq.s32.totalorder %v3042_v9, %v2758_v33  ;;  %vm2220_vm8 = vmpackc.low %vm172_vm3, %vm170_vm2  ;;  %vm179_vm2 = vcmp.eq.s32.totalorder %v3096_v15, %v2749_v30  ;;  %vm181_vm3 = vcmp.eq.s32.totalorder %v3099_v16, %v2749_v30 }
  0x55   :  { %vm2284_vm11 = vmpackc.low %vm236_vm5, %vm234_vm4  ;;  %vm243_vm5 = vcmp.eq.s32.totalorder %v3103_v17, %v2749_v30 }
  0x5a   :  { %2217 = vmatpush1.bf16.xpose.msk.msra.mxu0 %vm2216_vm12, %v3963_v36  ;;  %vm2222_vm12 = vmpackc.low %vm177_vm7, %vm175_vm6  ;;  %vm245_vm6 = vcmp.eq.s32.totalorder %v3106_v19, %v2749_v30 }
  0x5b   :  { %2281 = vmatpush1.bf16.xpose.msk.msra.mxu1 %vm2280_vm15, %v3963_v36  ;;  %2219 = vmatprep.subr.msk.bf16.mxu0 %vm2218_vm0, %v3963_v36  ;;  %vm176_vm15 = vcmp.eq.s32.totalorder %v3067_v12, %v2758_v33  ;;  %vm238_vm0 = vcmp.eq.s32.totalorder %v3071_v13, %v2758_v33  ;;  %vm2290_vm9 = vmpackc.low %vm245_vm6, %vm243_vm5  ;;  %vm182_vm6 = vcmp.eq.s32.totalorder %v3128_v20, %v2758_v33 }
  0x5c   :  { %2283 = vmatprep.subr.msk.bf16.mxu1 %vm2282_vm1, %v3963_v36  ;;  %vm240_vm1 = vcmp.eq.s32.totalorder %v3074_v14, %v2758_v33  ;;  %vm2224_vm4 = vmpackc.low %vm176_vm15, %vm174_vm14  ;;  %vm183_vm14 = vcmp.eq.s32.totalorder %v3128_v20, %v2749_v30  ;;  %vm185_vm15 = vcmp.eq.s32.totalorder %v3131_v21, %v2749_v30 }
  0x5d   :  { %vm2288_vm7 = vmpackc.low %vm240_vm1, %vm238_vm0  ;;  %vm247_vm1 = vcmp.eq.s32.totalorder %v3135_v22, %v2749_v30 }
  0x62   :  { %2221 = vmatpush1.bf16.xpose.msk.msra.mxu0 %vm2220_vm8, %v3963_v36  ;;  %vm2226_vm8 = vmpackc.low %vm181_vm3, %vm179_vm2  ;;  %vm249_vm2 = vcmp.eq.s32.totalorder %v3138_v24, %v2749_v30 }
  0x63   :  { %2285 = vmatpush1.bf16.xpose.msk.msra.mxu1 %vm2284_vm11, %v3963_v36  ;;  %2223 = vmatprep.subr.msk.bf16.mxu0 %vm2222_vm12, %v3963_v36  ;;  %vm180_vm11 = vcmp.eq.s32.totalorder %v3099_v16, %v2758_v33  ;;  %vm242_vm12 = vcmp.eq.s32.totalorder %v3103_v17, %v2758_v33  ;;  %vm2294_vm5 = vmpackc.low %vm249_vm2, %vm247_vm1  ;;  %vm186_vm2 = vcmp.eq.s32.totalorder %v3160_v25, %v2758_v33  ;;  %v2678_v17 = vmov 1966171168  }
  0x64   :  { %2287 = vmatprep.subr.msk.bf16.mxu1 %vm2286_vm13, %v3963_v36  ;;  %vm244_vm13 = vcmp.eq.s32.totalorder %v3106_v19, %v2758_v33  ;;  %vm2228_vm0 = vmpackc.low %vm180_vm11, %vm178_vm10  ;;  %vm187_vm10 = vcmp.eq.s32.totalorder %v3160_v25, %v2749_v30  ;;  %vm189_vm11 = vcmp.eq.s32.totalorder %v3163_v29, %v2749_v30  ;;  %v3234_v25 = vadd.s32 504, %v2734_v18 }
  0x65   :  { %vm2292_vm3 = vmpackc.low %vm244_vm13, %vm242_vm12  ;;  %vm251_vm13 = vcmp.eq.s32.totalorder %v3167_v53, %v2749_v30 }
  0x66   :  { %4055 = vst [vmem:[#allocation33_spill] sm:$0xff] %v3234_v25 }
  0x6a   :  { %2225 = vmatpush1.bf16.xpose.msk.msra.mxu0 %vm2224_vm4, %v3963_v36  ;;  %vm2230_vm4 = vmpackc.low %vm185_vm15, %vm183_vm14  ;;  %vm253_vm14 = vcmp.eq.s32.totalorder %v3170_v56, %v2749_v30 }
  0x6b   :  { %2289 = vmatpush1.bf16.xpose.msk.msra.mxu1 %vm2288_vm7, %v3963_v36  ;;  %2227 = vmatprep.subr.msk.bf16.mxu0 %vm2226_vm8, %v3963_v36  ;;  %vm184_vm7 = vcmp.eq.s32.totalorder %v3131_v21, %v2758_v33  ;;  %vm246_vm8 = vcmp.eq.s32.totalorder %v3135_v22, %v2758_v33  ;;  %vm2298_vm1 = vmpackc.low %vm253_vm14, %vm251_vm13  ;;  %v3202_v22 = vadd.s32 488, %v2734_v18  ;;  %vm190_vm14 = vcmp.eq.s32.totalorder %v3192_v60, %v2758_v33 }
  0x6c   :  { %2291 = vmatprep.subr.msk.bf16.mxu1 %vm2290_vm9, %v3963_v36  ;;  %vm248_vm9 = vcmp.eq.s32.totalorder %v3138_v24, %v2758_v33  ;;  %vm2232_vm12 = vmpackc.low %vm184_vm7, %vm182_vm6  ;;  %v3199_v24 = vadd.s32 480, %v2734_v18  ;;  %vm191_vm6 = vcmp.eq.s32.totalorder %v3192_v60, %v2749_v30  ;;  %vm193_vm7 = vcmp.eq.s32.totalorder %v3195_v10, %v2749_v30 }
  0x6d   :  { %vm2296_vm15 = vmpackc.low %vm248_vm9, %vm246_vm8  ;;  %4050 = vst [vmem:[#allocation29_spill] sm:$0xff] %v3202_v22 }
  0x6e   :  { %4049 = vst [vmem:[#allocation28_spill] sm:$0xff] %v3199_v24  ;;  %vm255_vm9 = vcmp.eq.s32.totalorder %v3199_v24, %v2749_v30 }
  0x72   :  { %2229 = vmatpush1.bf16.xpose.msk.msra.mxu0 %vm2228_vm0, %v3963_v36  ;;  %vm2234_vm0 = vmpackc.low %vm189_vm11, %vm187_vm10  ;;  %vm257_vm10 = vcmp.eq.s32.totalorder %v3202_v22, %v2749_v30 }
  0x73   :  { %2293 = vmatpush1.bf16.xpose.msk.msra.mxu1 %vm2292_vm3, %v3963_v36  ;;  %2231 = vmatprep.subr.msk.bf16.mxu0 %vm2230_vm4, %v3963_v36  ;;  %vm188_vm3 = vcmp.eq.s32.totalorder %v3163_v29, %v2758_v33  ;;  %vm250_vm4 = vcmp.eq.s32.totalorder %v3167_v53, %v2758_v33  ;;  %vm2302_vm13 = vmpackc.low %vm257_vm10, %vm255_vm9  ;;  %v4053_v53 = vmov 1.0|1.0   ;;  %v3231_v29 = vadd.s32 496, %v2734_v18 }
  0x74   :  { %2295 = vmatprep.subr.msk.bf16.mxu1 %vm2294_vm5, %v3963_v36  ;;  %vm252_vm5 = vcmp.eq.s32.totalorder %v3170_v56, %v2758_v33  ;;  %vm2236_vm8 = vmpackc.low %vm188_vm3, %vm186_vm2  ;;  %v3227_v56 = vadd.s32 248, %v2734_v18 }
  0x75   :  { %vm2300_vm11 = vmpackc.low %vm252_vm5, %vm250_vm4  ;;  %4054 = vst [vmem:[#allocation32_spill] sm:$0xff] %v3231_v29  ;;  %vm259_vm5 = vcmp.eq.s32.totalorder %v3231_v29, %v2749_v30 }
  0x76   :  { %4052 = vst [vmem:[#allocation31_spill] sm:$0xff] %v3227_v56  ;;  %vm197_vm3 = vcmp.eq.s32.totalorder %v3227_v56, %v2749_v30 }
  0x7a   :  { %2233 = vmatpush1.bf16.xpose.msk.msra.mxu0 %vm2232_vm12, %v3963_v36  ;;  %vm2238_vm12 = vmpackc.low %vm193_vm7, %vm191_vm6  ;;  %vm261_vm6 = vcmp.eq.s32.totalorder %v3234_v25, %v2749_v30 }
  0x7b   :  { %2297 = vmatpush1.bf16.xpose.msk.msra.mxu1 %vm2296_vm15, %v3963_v36  ;;  %2235 = vmatprep.subr.msk.bf16.mxu0 %vm2234_vm0, %v3963_v36  ;;  %vm192_vm15 = vcmp.eq.s32.totalorder %v3195_v10, %v2758_v33  ;;  %vm254_vm0 = vcmp.eq.s32.totalorder %v3199_v24, %v2758_v33  ;;  %vm2306_vm9 = vmpackc.low %vm261_vm6, %vm259_vm5  ;;  %vm4025_vm6 = vcmask 1046528  }
  0x7c   :  { %2299 = vmatprep.subr.msk.bf16.mxu1 %vm2298_vm1, %v3963_v36  ;;  %v3224_v36 = vadd.s32 240, %v2734_v18  ;;  %vm256_vm1 = vcmp.eq.s32.totalorder %v3202_v22, %v2758_v33  ;;  %vm2240_vm4 = vmpackc.low %vm192_vm15, %vm190_vm14 }
  0x7d   :  { %vm2304_vm7 = vmpackc.low %vm256_vm1, %vm254_vm0  ;;  %vm1002_vm0 = vcmask 39936  }
  0x7e   :  { %4051 = vst [vmem:[#allocation30_spill] sm:$0xff] %v3224_v36  ;;  %vm195_vm2 = vcmp.eq.s32.totalorder %v3224_v36, %v2749_v30  ;;  %vm194_vm10 = vcmp.eq.s32.totalorder %v3224_v36, %v2758_v33  ;;  %v29_v30 = vld [vmem:[%s3949_s0] sm:$0xff] }
  0x7f   :  { %v582_v36 = vpack.c.bf16 %v29_v30, %v29_v30 }
  0x82   :  { %2237 = vmatpush1.bf16.xpose.msk.msra.mxu0 %vm2236_vm8, %v4053_v53  ;;  %vm2242_vm8 = vmpackc.low %vm197_vm3, %vm195_vm2 }
  0x83   :  { %2301 = vmatpush1.bf16.xpose.msk.msra.mxu1 %vm2300_vm11, %v4053_v53  ;;  %2239 = vmatprep.subr.msk.bf16.mxu0 %vm2238_vm12, %v4053_v53  ;;  %vm196_vm11 = vcmp.eq.s32.totalorder %v3227_v56, %v2758_v33  ;;  %vm258_vm12 = vcmp.eq.s32.totalorder %v3231_v29, %v2758_v33  ;;  %v3989_v56 = vmov 0.0  }
  0x84   :  { %2303 = vmatprep.subr.msk.bf16.mxu1 %vm2302_vm13, %v4053_v53  ;;  %vm260_vm13 = vcmp.eq.s32.totalorder %v3234_v25, %v2758_v33  ;;  %vm2244_vm14 = vmpackc.low %vm196_vm11, %vm194_vm10  ;;  %v710_v33 = vld [vmem:[%s3951_s2] sm:$0x77]  ;;  %v711_v25 = vld [vmem:[%s3951_s2 + $0x8] sm:$0x77] }
  0x85   :  { %vm2308_vm15 = vmpackc.low %vm260_vm13, %vm258_vm12  ;;  %v714_v29 = vcombine.high %v710_v33, %v710_v33  ;;  %v715_v22 = vcombine.high %v711_v25, %v711_v25  ;;  %v716_v24 = vrot.slane %v710_v33, 1  ;;  %v718_v10 = vrot.slane %v711_v25, 1  ;;  %v2327_v25 = vld [vmem:[%s3949_s0 + $0x38] sm:$0x7] }
  0x87   :  { %v717_v30 = vrot.slane %v714_v29, 1  ;;  %v719_v60 = vrot.slane %v715_v22, 1  ;;  %724 = vst [vmem:[%s3955_s6 + $0x20] ss:$-28 sps:$4 sm:$0x83] %v716_v24   ;;  %v3300_v22 = vld [vmem:[%s3953_s4] sm:$0xff]  ;;  %v1078_v29 = vfloor.f32 %v2327_v25 }
  0x88   :  { %726 = vst [vmem:[%s3955_s6 + $0x30] ss:$-28 sps:$4 sm:$0x83] %v718_v10   ;;  %4057 = vst [vmem:[#allocation35_spill] sm:$0xff] %v3300_v22 }
  0x89   :  { %725 = vst [vmem:[%s3955_s6 + $0x28] ss:$-28 sps:$4 sm:$0x83] %v717_v30   ;;  %727 = vst [vmem:[%s3955_s6 + $0x38] ss:$-28 sps:$4 sm:$0x83] %v719_v60  }
  0x8a   :  { %2241 = vmatpush1.bf16.xpose.msk.msra.mxu0 %vm2240_vm4, %v4053_v53  ;;  %v2326_v60 = vld [vmem:[%s3949_s0 + $0x30] sm:$0x7]  ;;  %v1080_v30 = vmax.f32 %v1078_v29, 0.0 }
  0x8b   :  { %2305 = vmatpush1.bf16.xpose.msk.msra.mxu1 %vm2304_vm7, %v4053_v53  ;;  %2243 = vmatprep.subr.msk.bf16.mxu0 %vm2242_vm8, %v4053_v53  ;;  %v1077_v33 = vfloor.f32 %v2326_v60 }
  0x8c   :  { %2307 = vmatprep.subr.msk.bf16.mxu1 %vm2306_vm9, %v4053_v53  ;;  %v1082_v21 = vmin.f32 %v1080_v30, 7.0  ;;  %vm803_vm9 = vcmask 56320  }
  0x8e   :  { %v1086_v19 = vmul.f32 8.0, %v1082_v21  ;;  %v1098_v25 = vrot.slane %v1082_v21, 2 }
  0x92   :  { %2245 = vmatpush1.bf16.xpose.msk.msra.mxu0 %vm2244_vm14, %v4053_v53 }
  0x93   :  { %2309 = vmatpush1.bf16.xpose.msk.msra.mxu1 %vm2308_vm15, %v4053_v53 }
  0x99   :  { %617 = vmatmul.mubr.bf16.vlgmr.msra.gmra.mrb[0].mxu0 %v582_v36 }
  0x9a   :  { %658 = vmatmul.mubr.bf16.vlgmr.msra.gmra.mrb[0].mxu1 %v582_v36  ;;  %885 = vmatprep.mubr.f32.mxu0 %v3989_v56  ;;  %v3295_v36 = vld [vmem:[%s3950_s1] ss:$0 sm:$0xff] }
  0x9b   :  { %962 = vmatprep.mubr.f32.mxu1 %v3989_v56  ;;  %4056 = vst [vmem:[#allocation34_spill] sm:$0xff] %v3295_v36  ;;  %v1000_v10 = vmul.f32 %v3295_v36, %v3300_v22  ;;  %v1079_v56 = vmax.f32 %v1077_v33, 0.0  ;;  %v739_v36 = vunpack.c.l.s4 %v2678_v17  ;;  %v4058_v17 = vmov 0.0  }
  0x9d   :  { %v1003_v24 = vsel %vm1002_vm0, %v1000_v10, 0.0  ;;  %v1081_v20 = vmin.f32 %v1079_v56, 7.0  ;;  %v1084_v10 = vmul.f32 64.0, %v1082_v21  ;;  %v740_v16 = vunpack.c.0.s8 %v739_v36 }
  0x9e   :  { %1004 = vadd.xlane.f32.xlu1 %v1003_v24  ;;  %v1090_v24 = vrot.slane %v1086_v19, 1 }
  0x9f   :  { %v1085_v22 = vmul.f32 8.0, %v1081_v20  ;;  %v1083_v15 = vmul.f32 64.0, %v1081_v20  ;;  %v3312_v11 = vsub.s32 %v740_v16, %v2734_v18  ;;  %v1097_v9 = vrot.slane %v1081_v20, 2 }
  0xa0   :  { %v1094_v13 = vadd.f32 %v1090_v24, %v1084_v10 }
  0xa1   :  { %v1089_v14 = vrot.slane %v1085_v22, 1 }
  0xa2   :  { %v1102_v30 = vadd.f32 %v1098_v25, %v1094_v13 }
  0xa3   :  { %v1093_v60 = vadd.f32 %v1089_v14, %v1083_v15 }
 0x16c   :  { %v618_v12 = vpop.f32.mrb[0].mxu0 }
 0x16d   :  { %v666_v29 = vmax.f32 %v618_v12, 1.0  ;;  %vm694_vm1 = vcmp.gt.f32.partialorder %v618_v12, 0.5  ;;  %v659_v33 = vpop.f32.mrb[0].mxu1  ;;  %v620_v56 = vpop.f32.mrb[1].mxu0 }
 0x16e   :  { %v3315_v8 = vsel %vm694_vm1, 1.0, %v4058_v17  ;;  %v668_v19 = vmax.f32 %v659_v33, 1.0  ;;  %vm696_vm2 = vcmp.gt.f32.partialorder %v659_v33, 0.5  ;;  %v667_v36 = vmax.f32 %v620_v56, 1.0  ;;  %v661_v22 = vpop.f32.mrb[1].mxu1  ;;  %v622_v10 = vpop.f32.mrb[2].mxu0 }
 0x16f   :  { %4059 = vst [vmem:[#allocation36_spill] sm:$0xff] %v3315_v8  ;;  %2633 = vrcp.f32 %v666_v29  ;;  %v3318_v21 = vsel %vm696_vm2, 1.0, %v4058_v17  ;;  %vm695_vm3 = vcmp.gt.f32.partialorder %v620_v56, 0.5  ;;  %v669_v14 = vmax.f32 %v661_v22, 1.0  ;;  %v663_v15 = vpop.f32.mrb[2].mxu1  ;;  %v623_v16 = vpop.f32.mrb[3].mxu0 }
 0x170   :  { %2635 = vrcp.f32 %v668_v19  ;;  %v3321_v13 = vsel %vm695_vm3, 1.0, %v4058_v17  ;;  %vm697_vm4 = vcmp.gt.f32.partialorder %v661_v22, 0.5  ;;  %v664_v20 = vpop.f32.mrb[3].mxu1  ;;  %v1101_v29 = vadd.f32 %v1097_v9, %v1093_v60 }
 0x171   :  { %4060 = vst [vmem:[#allocation37_spill] sm:$0xff] %v3321_v13  ;;  %2637 = vrcp.f32 %v667_v36  ;;  %v736_v24 = vcombine.high %v3315_v8, %v3321_v13  ;;  %v3326_v25 = vsel %vm697_vm4, 1.0, %v4058_v17  ;;  %v2619_v15 = vtrunc.f32 %v1102_v30 }
 0x172   :  { %2639 = vrcp.f32 %v669_v14  ;;  %v737_v10 = vcombine.high %v3318_v21, %v3326_v25  ;;  %v2617_v7 = vtrunc.f32 %v1101_v29  ;;  %v3333_v36 = vsub.s32 7, %v2734_v18 }
 0x173   :  { %v744_v19 = vrot.slane %v736_v24, %v3312_v11  ;;  %v2620_v20 = vcvt.f32.s32 %v2619_v15  ;;  %v4061_v9 = vlaneseq }
 0x174   :  { %v751_v16 = vrot.slane %v737_v10, %v3312_v11  ;;  %v2618_v5 = vcvt.f32.s32 %v2617_v7 }
 0x175   :  { %vm3337_vm5 = vcmp.lt.s32.totalorder %v4061_v9, 512  ;;  %v3343_v29 = vrot.slane %v2620_v20, %v2737_v23  ;;  %v3726_v20 = vpop.permute.xlu0 %771 }
 0x176   :  { %v752_v6 = vcombine.high %v744_v19, %v751_v16  ;;  %v4095_v9 = vld [vmem:[#allocation36_spill] sm:$0xff] }
 0x177   :  { %vm1114_vm7 = vcmp.eq.s32.totalorder %v2734_v18, %v3343_v29  ;;  %vm1116_vm8 = vcmp.eq.s32.totalorder %v2740_v26, %v3343_v29  ;;  %vm1178_vm10 = vcmp.eq.s32.totalorder %v2743_v27, %v3343_v29  ;;  %vm1180_vm11 = vcmp.eq.s32.totalorder %v2746_v28, %v3343_v29 }
 0x178   :  { %v759_v13 = vrot.slane %v752_v6, %v3312_v11  ;;  %vm2456_vm12 = vmpackc.low %vm1116_vm8, %vm1114_vm7  ;;  %vm1118_vm3 = vcmp.eq.s32.totalorder %v2752_v31, %v3343_v29  ;;  %vm1120_vm4 = vcmp.eq.s32.totalorder %v2755_v32, %v3343_v29  ;;  %vm1182_vm8 = vcmp.eq.s32.totalorder %v2761_v34, %v3343_v29 }
 0x179   :  { %v2634_v8 = vpop.eup %2633  ;;  %vm2520_vm15 = vmpackc.low %vm1180_vm11, %vm1178_vm10  ;;  %vm1184_vm10 = vcmp.eq.s32.totalorder %v2764_v35, %v3343_v29 }
 0x17a   :  { %v2636_v30 = vpop.eup %2635  ;;  %v677_v14 = vrot.slane %v2634_v8, %v3333_v36  ;;  %v760_v24 = vcombine.high %v759_v13, %v759_v13  ;;  %v3354_v13 = vrot.slane %v2618_v5, %v2737_v23  ;;  %v2325_v23 = vld [vmem:[%s3949_s0 + $0x28] sm:$0xff] }
 0x17b   :  { %v2638_v10 = vpop.eup %2637  ;;  %v685_v15 = vrot.slane %v2636_v30, %v3333_v36  ;;  %v4094_v5 = vld [vmem:[#allocation33_spill] sm:$0xff]  ;;  %v782_v30 = vrot.slane %v4095_v9, %v3333_v36 }
 0x17c   :  { %v2640_v19 = vpop.eup %2639  ;;  %v690_v16 = vmul.f32 %v677_v14, %v618_v12  ;;  %v681_v6 = vrot.slane %v2638_v10, %v3333_v36  ;;  %2314 = vst.msk [vmem:[%s3955_s6 + $0x22] ss:$8 sm:$0xf] %vm3337_vm5, %v760_v24  ;;  %vm1113_vm13 = vcmp.eq.s32.totalorder %v2734_v18, %v3354_v13  ;;  %vm1115_vm14 = vcmp.eq.s32.totalorder %v2740_v26, %v3354_v13  ;;  %v4064_v18 = vld [vmem:[#allocation5_spill] sm:$0xff]  ;;  %v3736_v10 = vpop.permute.xlu0 %776 }
 0x17d   :  { %v692_v7 = vmul.f32 %v685_v15, %v659_v33  ;;  %v689_v8 = vrot.slane %v2640_v19, %v3333_v36  ;;  %vm1177_vm1 = vcmp.eq.s32.totalorder %v2743_v27, %v3354_v13  ;;  %vm1179_vm2 = vcmp.eq.s32.totalorder %v2746_v28, %v3354_v13  ;;  %vm2458_vm7 = vmpackc.low %vm1115_vm14, %vm1113_vm13  ;;  %v4065_v27 = vld [vmem:[#allocation6_spill] sm:$0xff]  ;;  %v4066_v28 = vld [vmem:[#allocation7_spill] sm:$0xff] }
 0x17e   :  { %706 = vst [vmem:[%s3955_s6] sm:$0x7f] %v690_v16  ;;  %v691_v12 = vmul.f32 %v681_v6, %v620_v56  ;;  %v1562_v26 = vpack.c.bf16 %v2325_v23, %v2325_v23  ;;  %vm2522_vm11 = vmpackc.low %vm1179_vm2, %vm1177_vm1  ;;  %vm1117_vm13 = vcmp.eq.s32.totalorder %v2752_v31, %v3354_v13  ;;  %vm1119_vm14 = vcmp.eq.s32.totalorder %v2755_v32, %v3354_v13  ;;  %v4067_v31 = vld [vmem:[#allocation8_spill] sm:$0xff]  ;;  %v4068_v32 = vld [vmem:[#allocation9_spill] sm:$0xff] }
 0x17f   :  { %708 = vst [vmem:[%s3955_s6 + $0x10] sm:$0x7f] %v692_v7  ;;  %v693_v33 = vmul.f32 %v689_v8, %v661_v22  ;;  %vm1183_vm1 = vcmp.eq.s32.totalorder %v2764_v35, %v3354_v13  ;;  %vm1122_vm2 = vcmp.eq.s32.totalorder %v2793_v37, %v3343_v29  ;;  %v4070_v35 = vld [vmem:[#allocation11_spill] sm:$0xff]  ;;  %v2324_v56 = vld [vmem:[%s3949_s0 + $0x20] sm:$0xff]  ;;  %v790_v14 = vrot.slane %v3318_v21, %v3333_v36  ;;  %v4096_v24 = vld [vmem:[#allocation37_spill] sm:$0xff] }
 0x180   :  { %707 = vst [vmem:[%s3955_s6 + $0x8] sm:$0x7f] %v691_v12  ;;  %2315 = vmatprep.subr.msk.mxu0 %vm4025_vm6, %v691_v12  ;;  %v1561_v22 = vpack.c.bf16 %v2324_v56, %v2324_v56  ;;  %v795_v15 = vmul.f32 %v782_v30, %v3726_v20  ;;  %v3754_v12 = vld [vmem:[%s3954_s5 + $0x8] sm:$0xff] }
 0x181   :  { %709 = vst [vmem:[%s3955_s6 + $0x18] sm:$0x7f] %v693_v33  ;;  %2319 = vmatprep.subr.msk.mxu1 %vm4025_vm6, %v693_v33  ;;  %2316 = vmatpush1.msk.msra.mxu0 %vm4025_vm6, %v690_v16  ;;  %v3742_v16 = vld [vmem:[%s3954_s5] sm:$0xff]  ;;  %v797_v6 = vmul.f32 %v790_v14, %v3726_v20 }
 0x182   :  { %2320 = vmatpush1.msk.msra.mxu1 %vm4025_vm6, %v692_v7  ;;  %2317 = vmatmul.mubr.msk.f32.vlgmr.msra.gmra.mrb[4].mxu0 %vm803_vm9, %v2945_v59  ;;  %vm2460_vm6 = vmpackc.low %vm1120_vm4, %vm1118_vm3  ;;  %vm1186_vm4 = vcmp.eq.s32.totalorder %v2800_v39, %v3343_v29 }
 0x183   :  { %2321 = vmatmul.mubr.msk.f32.vlgmr.msra.gmra.mrb[4].mxu1 %vm803_vm9, %v2945_v59  ;;  %891 = vmatprep.mubr.f32.mxu0 %v4058_v17  ;;  %vm2462_vm3 = vmpackc.low %vm1119_vm14, %vm1117_vm13  ;;  %vm1123_vm13 = vcmp.eq.s32.totalorder %v2796_v38, %v3354_v13  ;;  %vm1185_vm14 = vcmp.eq.s32.totalorder %v2800_v39, %v3354_v13  ;;  %v4073_v39 = vld [vmem:[#allocation14_spill] sm:$0xff]  ;;  %v4086_v59 = vld [vmem:[#allocation25_spill] sm:$0xff] }
 0x184   :  { %968 = vmatprep.mubr.f32.mxu1 %v4058_v17  ;;  %2457 = vmatprep.subr.msk.bf16.mxu0 %vm2456_vm12, %v4053_v53  ;;  %vm2524_vm12 = vmpackc.low %vm1184_vm10, %vm1182_vm8 }
 0x185   :  { %2521 = vmatprep.subr.msk.bf16.mxu1 %vm2520_vm15, %v4053_v53  ;;  %vm1181_vm15 = vcmp.eq.s32.totalorder %v2761_v34, %v3354_v13  ;;  %v4069_v34 = vld [vmem:[#allocation10_spill] sm:$0xff] }
 0x186   :  { %2318 = vmatmul.mubr.msk.f32.gmra.mrb[6].mxu0 %vm803_vm9, %v2964_v61  ;;  %vm2526_vm8 = vmpackc.low %vm1183_vm1, %vm1181_vm15  ;;  %vm1187_vm15 = vcmp.eq.s32.totalorder %v2803_v40, %v3354_v13  ;;  %vm1126_vm1 = vcmp.eq.s32.totalorder %v2825_v41, %v3343_v29 }
 0x187   :  { %2322 = vmatmul.mubr.msk.f32.gmra.mrb[6].mxu1 %vm803_vm9, %v2964_v61  ;;  %1595 = vmatprep.mubr.bf16.mxu0 %v1562_v26 }
 0x188   :  { %2459 = vmatpush1.bf16.xpose.msk.msra.mxu0 %vm2458_vm7, %v4053_v53  ;;  %1636 = vmatprep.mubr.bf16.mxu1 %v1562_v26  ;;  %vm1188_vm7 = vcmp.eq.s32.totalorder %v2803_v40, %v3343_v29  ;;  %v4074_v40 = vld [vmem:[#allocation15_spill] sm:$0xff] }
 0x189   :  { %2523 = vmatpush1.bf16.xpose.msk.msra.mxu1 %vm2522_vm11, %v4053_v53  ;;  %2461 = vmatprep.subr.msk.bf16.mxu0 %vm2460_vm6, %v4053_v53  ;;  %vm1124_vm6 = vcmp.eq.s32.totalorder %v2796_v38, %v3343_v29  ;;  %vm2528_vm11 = vmpackc.low %vm1188_vm7, %vm1186_vm4  ;;  %vm1192_vm4 = vcmp.eq.s32.totalorder %v2835_v44, %v3343_v29  ;;  %v4072_v38 = vld [vmem:[#allocation13_spill] sm:$0xff] }
 0x18a   :  { %2525 = vmatprep.subr.msk.bf16.mxu1 %vm2524_vm12, %v4053_v53  ;;  %vm2464_vm10 = vmpackc.low %vm1124_vm6, %vm1122_vm2  ;;  %vm1121_vm12 = vcmp.eq.s32.totalorder %v2793_v37, %v3354_v13  ;;  %vm1128_vm2 = vcmp.eq.s32.totalorder %v2828_v42, %v3343_v29  ;;  %v4071_v37 = vld [vmem:[#allocation12_spill] sm:$0xff] }
 0x18b   :  { %vm2466_vm6 = vmpackc.low %vm1123_vm13, %vm1121_vm12  ;;  %vm1127_vm12 = vcmp.eq.s32.totalorder %v2828_v42, %v3354_v13  ;;  %vm1189_vm13 = vcmp.eq.s32.totalorder %v2832_v43, %v3354_v13  ;;  %v4076_v42 = vld [vmem:[#allocation17_spill] sm:$0xff] }
 0x18c   :  { %vm2530_vm7 = vmpackc.low %vm1187_vm15, %vm1185_vm14  ;;  %vm1191_vm14 = vcmp.eq.s32.totalorder %v2835_v44, %v3354_v13  ;;  %vm1130_vm15 = vcmp.eq.s32.totalorder %v2857_v45, %v3343_v29  ;;  %v4078_v44 = vld [vmem:[#allocation19_spill] sm:$0xff] }
 0x190   :  { %2463 = vmatpush1.bf16.xpose.msk.msra.mxu0 %vm2462_vm3, %v4053_v53  ;;  %vm1190_vm3 = vcmp.eq.s32.totalorder %v2832_v43, %v3343_v29  ;;  %v4077_v43 = vld [vmem:[#allocation18_spill] sm:$0xff] }
 0x191   :  { %2527 = vmatpush1.bf16.xpose.msk.msra.mxu1 %vm2526_vm8, %v4053_v53  ;;  %2465 = vmatprep.subr.msk.bf16.mxu0 %vm2464_vm10, %v4053_v53  ;;  %vm2468_vm8 = vmpackc.low %vm1128_vm2, %vm1126_vm1  ;;  %vm1132_vm1 = vcmp.eq.s32.totalorder %v2860_v46, %v3343_v29 }
 0x192   :  { %2529 = vmatprep.subr.msk.bf16.mxu1 %vm2528_vm11, %v4053_v53  ;;  %vm2532_vm10 = vmpackc.low %vm1192_vm4, %vm1190_vm3  ;;  %vm1125_vm11 = vcmp.eq.s32.totalorder %v2825_v41, %v3354_v13  ;;  %vm1196_vm3 = vcmp.eq.s32.totalorder %v2867_v48, %v3343_v29  ;;  %v4075_v41 = vld [vmem:[#allocation16_spill] sm:$0xff] }
 0x193   :  { %vm2470_vm2 = vmpackc.low %vm1127_vm12, %vm1125_vm11  ;;  %vm1131_vm11 = vcmp.eq.s32.totalorder %v2860_v46, %v3354_v13  ;;  %vm1193_vm12 = vcmp.eq.s32.totalorder %v2864_v47, %v3354_v13  ;;  %v4080_v46 = vld [vmem:[#allocation21_spill] sm:$0xff] }
 0x194   :  { %vm2534_vm4 = vmpackc.low %vm1191_vm14, %vm1189_vm13  ;;  %vm1195_vm13 = vcmp.eq.s32.totalorder %v2867_v48, %v3354_v13  ;;  %vm1134_vm14 = vcmp.eq.s32.totalorder %v2889_v49, %v3343_v29  ;;  %v4081_v48 = vld [vmem:[#allocation35_spill] sm:$0xff] }
 0x198   :  { %2467 = vmatpush1.bf16.xpose.msk.msra.mxu0 %vm2466_vm6, %v4053_v53  ;;  %vm1194_vm6 = vcmp.eq.s32.totalorder %v2864_v47, %v3343_v29  ;;  %v3637_v47 = vld [vmem:[%s3950_s1 + $0x1] ss:$0 sm:$0xff] }
 0x199   :  { %2531 = vmatpush1.bf16.xpose.msk.msra.mxu1 %vm2530_vm7, %v4053_v53  ;;  %2469 = vmatprep.subr.msk.bf16.mxu0 %vm2468_vm8, %v4053_v53  ;;  %vm2472_vm7 = vmpackc.low %vm1132_vm1, %vm1130_vm15  ;;  %vm1136_vm15 = vcmp.eq.s32.totalorder %v2892_v50, %v3343_v29 }
 0x19a   :  { %2533 = vmatprep.subr.msk.bf16.mxu1 %vm2532_vm10, %v4053_v53  ;;  %vm2536_vm8 = vmpackc.low %vm1196_vm3, %vm1194_vm6  ;;  %vm1129_vm10 = vcmp.eq.s32.totalorder %v2857_v45, %v3354_v13  ;;  %vm1200_vm6 = vcmp.eq.s32.totalorder %v2899_v52, %v3343_v29  ;;  %v4079_v45 = vld [vmem:[#allocation20_spill] sm:$0xff] }
 0x19b   :  { %vm2474_vm1 = vmpackc.low %vm1131_vm11, %vm1129_vm10  ;;  %vm1135_vm10 = vcmp.eq.s32.totalorder %v2892_v50, %v3354_v13  ;;  %vm1197_vm11 = vcmp.eq.s32.totalorder %v2896_v51, %v3354_v13  ;;  %v993_v50 = vld [vmem:[%s3953_s4 + $0x8] sm:$0x7] }
 0x19c   :  { %vm2538_vm3 = vmpackc.low %vm1195_vm13, %vm1193_vm12  ;;  %vm1199_vm12 = vcmp.eq.s32.totalorder %v2899_v52, %v3354_v13  ;;  %vm1138_vm13 = vcmp.eq.s32.totalorder %v2924_v54, %v3343_v29  ;;  %v4082_v52 = vld [vmem:[#allocation34_spill] sm:$0xff] }
 0x1a0   :  { %2471 = vmatpush1.bf16.xpose.msk.msra.mxu0 %vm2470_vm2, %v4053_v53  ;;  %vm1198_vm2 = vcmp.eq.s32.totalorder %v2896_v51, %v3343_v29 }
 0x1a1   :  { %2535 = vmatpush1.bf16.xpose.msk.msra.mxu1 %vm2534_vm4, %v4053_v53  ;;  %2473 = vmatprep.subr.msk.bf16.mxu0 %vm2472_vm7, %v4053_v53  ;;  %vm2476_vm4 = vmpackc.low %vm1136_vm15, %vm1134_vm14  ;;  %vm1140_vm14 = vcmp.eq.s32.totalorder %v2927_v55, %v3343_v29 }
 0x1a2   :  { %2537 = vmatprep.subr.msk.bf16.mxu1 %vm2536_vm8, %v4053_v53  ;;  %vm2540_vm7 = vmpackc.low %vm1200_vm6, %vm1198_vm2  ;;  %vm1133_vm8 = vcmp.eq.s32.totalorder %v2889_v49, %v3354_v13  ;;  %vm1204_vm2 = vcmp.eq.s32.totalorder %v2934_v58, %v3343_v29  ;;  %v1961_v49 = vmul.f32 %v3637_v47, %v4081_v48 }
 0x1a3   :  { %vm2478_vm15 = vmpackc.low %vm1135_vm10, %vm1133_vm8  ;;  %vm1139_vm8 = vcmp.eq.s32.totalorder %v2927_v55, %v3354_v13  ;;  %vm1201_vm10 = vcmp.eq.s32.totalorder %v2931_v57, %v3354_v13  ;;  %v4083_v55 = vld [vmem:[#allocation22_spill] sm:$0xff] }
 0x1a4   :  { %vm2542_vm6 = vmpackc.low %vm1199_vm12, %vm1197_vm11  ;;  %vm1203_vm11 = vcmp.eq.s32.totalorder %v2934_v58, %v3354_v13  ;;  %vm1142_vm12 = vcmp.eq.s32.totalorder %v2967_v62, %v3343_v29  ;;  %v1963_v51 = vsel %vm1002_vm0, %v1961_v49, 0.0  ;;  %v4085_v58 = vld [vmem:[#allocation24_spill] sm:$0xff]  ;;  %v981_v49 = vld [vmem:[%s3954_s5 + $0x30] sm:$0x7] }
 0x1a5   :  { %1964 = vadd.xlane.f32.xlu1 %v1963_v51 }
 0x1a8   :  { %2475 = vmatpush1.bf16.xpose.msk.msra.mxu0 %vm2474_vm1, %v4053_v53  ;;  %vm1202_vm1 = vcmp.eq.s32.totalorder %v2931_v57, %v3343_v29  ;;  %v4084_v57 = vld [vmem:[#allocation23_spill] sm:$0xff] }
 0x1a9   :  { %2539 = vmatpush1.bf16.xpose.msk.msra.mxu1 %vm2538_vm3, %v4053_v53  ;;  %2477 = vmatprep.subr.msk.bf16.mxu0 %vm2476_vm4, %v4053_v53  ;;  %vm2480_vm3 = vmpackc.low %vm1140_vm14, %vm1138_vm13  ;;  %vm1144_vm13 = vcmp.eq.s32.totalorder %v2970_v63, %v3343_v29 }
 0x1aa   :  { %2541 = vmatprep.subr.msk.bf16.mxu1 %vm2540_vm7, %v4053_v53  ;;  %vm2544_vm4 = vmpackc.low %vm1204_vm2, %vm1202_vm1  ;;  %vm1137_vm7 = vcmp.eq.s32.totalorder %v2924_v54, %v3354_v13  ;;  %vm1208_vm1 = vcmp.eq.s32.totalorder %v2977_v1, %v3343_v29  ;;  %v1001_v54 = vmul.f32 %v4082_v52, %v993_v50 }
 0x1ab   :  { %vm2482_vm14 = vmpackc.low %vm1139_vm8, %vm1137_vm7  ;;  %vm1143_vm7 = vcmp.eq.s32.totalorder %v2970_v63, %v3354_v13  ;;  %vm1205_vm8 = vcmp.eq.s32.totalorder %v2974_v0, %v3354_v13  ;;  %v4088_v63 = vld [vmem:[#allocation27_spill] sm:$0xff] }
 0x1ac   :  { %vm2546_vm2 = vmpackc.low %vm1203_vm11, %vm1201_vm10  ;;  %vm1207_vm10 = vcmp.eq.s32.totalorder %v2977_v1, %v3354_v13  ;;  %vm1146_vm11 = vcmp.eq.s32.totalorder %v3000_v2, %v3343_v29  ;;  %v4090_v1 = vld [vmem:[#allocation29_spill] sm:$0xff] }
 0x1b0   :  { %2479 = vmatpush1.bf16.xpose.msk.msra.mxu0 %vm2478_vm15, %v4053_v53  ;;  %vm1206_vm15 = vcmp.eq.s32.totalorder %v2974_v0, %v3343_v29  ;;  %v4089_v0 = vld [vmem:[#allocation28_spill] sm:$0xff] }
 0x1b1   :  { %2543 = vmatpush1.bf16.xpose.msk.msra.mxu1 %vm2542_vm6, %v4053_v53  ;;  %2481 = vmatprep.subr.msk.bf16.mxu0 %vm2480_vm3, %v4053_v53  ;;  %vm2484_vm6 = vmpackc.low %vm1144_vm13, %vm1142_vm12  ;;  %vm1148_vm12 = vcmp.eq.s32.totalorder %v3003_v3, %v3343_v29 }
 0x1b2   :  { %2545 = vmatprep.subr.msk.bf16.mxu1 %vm2544_vm4, %v4053_v53  ;;  %vm2548_vm3 = vmpackc.low %vm1208_vm1, %vm1206_vm15  ;;  %vm1141_vm4 = vcmp.eq.s32.totalorder %v2967_v62, %v3354_v13  ;;  %vm1212_vm15 = vcmp.eq.s32.totalorder %v4064_v18, %v3343_v29  ;;  %v4087_v62 = vld [vmem:[#allocation26_spill] sm:$0xff] }
 0x1b3   :  { %vm2486_vm13 = vmpackc.low %vm1143_vm7, %vm1141_vm4  ;;  %vm1147_vm4 = vcmp.eq.s32.totalorder %v3003_v3, %v3354_v13  ;;  %vm1209_vm7 = vcmp.eq.s32.totalorder %v3007_v4, %v3354_v13  ;;  %v4092_v3 = vld [vmem:[#allocation31_spill] sm:$0xff] }
 0x1b4   :  { %vm2550_vm1 = vmpackc.low %vm1207_vm10, %vm1205_vm8  ;;  %vm1211_vm8 = vcmp.eq.s32.totalorder %v4064_v18, %v3354_v13  ;;  %vm1150_vm10 = vcmp.eq.s32.totalorder %v4065_v27, %v3343_v29 }
 0x1b8   :  { %2483 = vmatpush1.bf16.xpose.msk.msra.mxu0 %vm2482_vm14, %v4053_v53  ;;  %vm1210_vm14 = vcmp.eq.s32.totalorder %v3007_v4, %v3343_v29  ;;  %v4093_v4 = vld [vmem:[#allocation32_spill] sm:$0xff] }
 0x1b9   :  { %2547 = vmatpush1.bf16.xpose.msk.msra.mxu1 %vm2546_vm2, %v4053_v53  ;;  %2485 = vmatprep.subr.msk.bf16.mxu0 %vm2484_vm6, %v4053_v53  ;;  %vm2488_vm2 = vmpackc.low %vm1148_vm12, %vm1146_vm11  ;;  %vm1152_vm11 = vcmp.eq.s32.totalorder %v4066_v28, %v3343_v29 }
 0x1ba   :  { %2549 = vmatprep.subr.msk.bf16.mxu1 %vm2548_vm3, %v4053_v53  ;;  %vm2552_vm6 = vmpackc.low %vm1212_vm15, %vm1210_vm14  ;;  %vm1145_vm3 = vcmp.eq.s32.totalorder %v3000_v2, %v3354_v13  ;;  %vm1216_vm14 = vcmp.eq.s32.totalorder %v4068_v32, %v3343_v29  ;;  %v4091_v2 = vld [vmem:[#allocation30_spill] sm:$0xff] }
 0x1bb   :  { %vm2490_vm12 = vmpackc.low %vm1147_vm4, %vm1145_vm3  ;;  %vm1151_vm3 = vcmp.eq.s32.totalorder %v4066_v28, %v3354_v13  ;;  %vm1213_vm4 = vcmp.eq.s32.totalorder %v4067_v31, %v3354_v13  ;;  %v3762_v28 = vpop.xlane.xlu1 %1004 }
 0x1bc   :  { %vm2554_vm15 = vmpackc.low %vm1211_vm8, %vm1209_vm7  ;;  %vm1215_vm7 = vcmp.eq.s32.totalorder %v4068_v32, %v3354_v13  ;;  %vm1154_vm8 = vcmp.eq.s32.totalorder %v4069_v34, %v3343_v29 }
 0x1c0   :  { %2487 = vmatpush1.bf16.xpose.msk.msra.mxu0 %vm2486_vm13, %v4053_v53  ;;  %vm1214_vm13 = vcmp.eq.s32.totalorder %v4067_v31, %v3343_v29  ;;  %v799_v31 = vmul.f32 %v782_v30, %v3736_v10 }
 0x1c1   :  { %2551 = vmatpush1.bf16.xpose.msk.msra.mxu1 %vm2550_vm1, %v4053_v53  ;;  %2489 = vmatprep.subr.msk.bf16.mxu0 %vm2488_vm2, %v4053_v53  ;;  %vm2492_vm1 = vmpackc.low %vm1152_vm11, %vm1150_vm10  ;;  %vm1156_vm10 = vcmp.eq.s32.totalorder %v4070_v35, %v3343_v29 }
 0x1c2   :  { %2553 = vmatprep.subr.msk.bf16.mxu1 %vm2552_vm6, %v4053_v53  ;;  %vm2556_vm2 = vmpackc.low %vm1216_vm14, %vm1214_vm13  ;;  %vm1149_vm6 = vcmp.eq.s32.totalorder %v4065_v27, %v3354_v13  ;;  %vm1220_vm13 = vcmp.eq.s32.totalorder %v4072_v38, %v3343_v29  ;;  %v3760_v27 = vld [vmem:[%s3954_s5 + $0x18] sm:$0xff] }
 0x1c3   :  { %vm2494_vm11 = vmpackc.low %vm1151_vm3, %vm1149_vm6  ;;  %vm1155_vm6 = vcmp.eq.s32.totalorder %v4070_v35, %v3354_v13  ;;  %vm1217_vm3 = vcmp.eq.s32.totalorder %v4071_v37, %v3354_v13  ;;  %v801_v35 = vmul.f32 %v790_v14, %v3736_v10 }
 0x1c4   :  { %vm2558_vm14 = vmpackc.low %vm1215_vm7, %vm1213_vm4  ;;  %vm1219_vm4 = vcmp.eq.s32.totalorder %v4072_v38, %v3354_v13  ;;  %vm1158_vm7 = vcmp.eq.s32.totalorder %v4073_v39, %v3343_v29 }
 0x1c8   :  { %2491 = vmatpush1.bf16.xpose.msk.msra.mxu0 %vm2490_vm12, %v4053_v53  ;;  %vm1218_vm12 = vcmp.eq.s32.totalorder %v4071_v37, %v3343_v29 }
 0x1c9   :  { %2555 = vmatpush1.bf16.xpose.msk.msra.mxu1 %vm2554_vm15, %v4053_v53  ;;  %2493 = vmatprep.subr.msk.bf16.mxu0 %vm2492_vm1, %v4053_v53  ;;  %vm2496_vm15 = vmpackc.low %vm1156_vm10, %vm1154_vm8  ;;  %vm1160_vm8 = vcmp.eq.s32.totalorder %v4074_v40, %v3343_v29 }
 0x1ca   :  { %2557 = vmatprep.subr.msk.bf16.mxu1 %vm2556_vm2, %v4053_v53  ;;  %vm2560_vm1 = vmpackc.low %vm1220_vm13, %vm1218_vm12  ;;  %vm1153_vm2 = vcmp.eq.s32.totalorder %v4069_v34, %v3354_v13  ;;  %vm1224_vm12 = vcmp.eq.s32.totalorder %v4076_v42, %v3343_v29 }
 0x1cb   :  { %vm2498_vm10 = vmpackc.low %vm1155_vm6, %vm1153_vm2  ;;  %vm1159_vm2 = vcmp.eq.s32.totalorder %v4074_v40, %v3354_v13  ;;  %vm1221_vm6 = vcmp.eq.s32.totalorder %v4075_v41, %v3354_v13 }
 0x1cc   :  { %vm2562_vm13 = vmpackc.low %vm1219_vm4, %vm1217_vm3  ;;  %vm1223_vm3 = vcmp.eq.s32.totalorder %v4076_v42, %v3354_v13  ;;  %vm1162_vm4 = vcmp.eq.s32.totalorder %v4077_v43, %v3343_v29 }
 0x1d0   :  { %2495 = vmatpush1.bf16.xpose.msk.msra.mxu0 %vm2494_vm11, %v4053_v53  ;;  %vm1222_vm11 = vcmp.eq.s32.totalorder %v4075_v41, %v3343_v29  ;;  %v979_v41 = vld [vmem:[%s3954_s5 + $0x20] sm:$0x7] }
 0x1d1   :  { %2559 = vmatpush1.bf16.xpose.msk.msra.mxu1 %vm2558_vm14, %v4053_v53  ;;  %2497 = vmatprep.subr.msk.bf16.mxu0 %vm2496_vm15, %v4053_v53  ;;  %vm2500_vm14 = vmpackc.low %vm1160_vm8, %vm1158_vm7  ;;  %vm1164_vm7 = vcmp.eq.s32.totalorder %v4078_v44, %v3343_v29 }
 0x1d2   :  { %2561 = vmatprep.subr.msk.bf16.mxu1 %vm2560_vm1, %v4053_v53  ;;  %vm2564_vm15 = vmpackc.low %vm1224_vm12, %vm1222_vm11  ;;  %vm1157_vm1 = vcmp.eq.s32.totalorder %v4073_v39, %v3354_v13  ;;  %vm1228_vm11 = vcmp.eq.s32.totalorder %v4080_v46, %v3343_v29 }
 0x1d3   :  { %vm2502_vm8 = vmpackc.low %vm1159_vm2, %vm1157_vm1  ;;  %vm1163_vm1 = vcmp.eq.s32.totalorder %v4078_v44, %v3354_v13  ;;  %vm1006_vm2 = vcmask 34816  }
 0x1d4   :  { %vm2566_vm12 = vmpackc.low %vm1223_vm3, %vm1221_vm6  ;;  %vm1225_vm6 = vcmp.eq.s32.totalorder %v4079_v45, %v3354_v13  ;;  %vm1227_vm3 = vcmp.eq.s32.totalorder %v4080_v46, %v3354_v13  ;;  %v1007_v61 = vsel %vm1006_vm2, %v1001_v54, 0.0 }
 0x1d5   :  { %1008 = vadd.xlane.f32.xlu1 %v1007_v61 }
 0x1d8   :  { %2499 = vmatpush1.bf16.xpose.msk.msra.mxu0 %vm2498_vm10, %v4053_v53  ;;  %vm1226_vm10 = vcmp.eq.s32.totalorder %v4079_v45, %v3343_v29 }
 0x1d9   :  { %2563 = vmatpush1.bf16.xpose.msk.msra.mxu1 %vm2562_vm13, %v4053_v53  ;;  %2501 = vmatprep.subr.msk.bf16.mxu0 %vm2500_vm14, %v4053_v53  ;;  %vm2504_vm13 = vmpackc.low %vm1164_vm7, %vm1162_vm4  ;;  %vm1166_vm4 = vcmp.eq.s32.totalorder %v4083_v55, %v3343_v29  ;;  %vm1168_vm7 = vcmp.eq.s32.totalorder %v4084_v57, %v3343_v29 }
 0x1da   :  { %2565 = vmatprep.subr.msk.bf16.mxu1 %vm2564_vm15, %v4053_v53  ;;  %vm2568_vm14 = vmpackc.low %vm1228_vm11, %vm1226_vm10  ;;  %vm1161_vm15 = vcmp.eq.s32.totalorder %v4077_v43, %v3354_v13  ;;  %vm1230_vm10 = vcmp.eq.s32.totalorder %v4085_v58, %v3343_v29  ;;  %vm1232_vm11 = vcmp.eq.s32.totalorder %v4086_v59, %v3343_v29 }
 0x1db   :  { %vm2508_vm0 = vmpackc.low %vm1168_vm7, %vm1166_vm4  ;;  %vm1172_vm4 = vcmp.eq.s32.totalorder %v4088_v63, %v3343_v29 }
 0x1e0   :  { %2503 = vmatpush1.bf16.xpose.msk.msra.mxu0 %vm2502_vm8, %v4053_v53  ;;  %vm2506_vm8 = vmpackc.low %vm1163_vm1, %vm1161_vm15  ;;  %vm1167_vm15 = vcmp.eq.s32.totalorder %v4084_v57, %v3354_v13  ;;  %vm1229_vm1 = vcmp.eq.s32.totalorder %v4085_v58, %v3354_v13  ;;  %v980_v57 = vld [vmem:[%s3954_s5 + $0x28] sm:$0x7] }
 0x1e1   :  { %2567 = vmatpush1.bf16.xpose.msk.msra.mxu1 %vm2566_vm12, %v4053_v53  ;;  %2505 = vmatprep.subr.msk.bf16.mxu0 %vm2504_vm13, %v4053_v53  ;;  %vm2570_vm12 = vmpackc.low %vm1227_vm3, %vm1225_vm6  ;;  %vm1231_vm6 = vcmp.eq.s32.totalorder %v4086_v59, %v3354_v13  ;;  %vm1170_vm3 = vcmp.eq.s32.totalorder %v4087_v62, %v3343_v29 }
 0x1e2   :  { %2569 = vmatprep.subr.msk.bf16.mxu1 %vm2568_vm14, %v4053_v53  ;;  %vm2572_vm13 = vmpackc.low %vm1232_vm11, %vm1230_vm10  ;;  %vm1165_vm14 = vcmp.eq.s32.totalorder %v4083_v55, %v3354_v13  ;;  %vm1236_vm10 = vcmp.eq.s32.totalorder %v4090_v1, %v3343_v29 }
 0x1e3   :  { %vm2510_vm7 = vmpackc.low %vm1167_vm15, %vm1165_vm14  ;;  %vm1171_vm14 = vcmp.eq.s32.totalorder %v4088_v63, %v3354_v13  ;;  %vm1233_vm15 = vcmp.eq.s32.totalorder %v4089_v0, %v3354_v13 }
 0x1e4   :  { %vm2574_vm11 = vmpackc.low %vm1231_vm6, %vm1229_vm1  ;;  %vm1235_vm1 = vcmp.eq.s32.totalorder %v4090_v1, %v3354_v13  ;;  %vm1174_vm6 = vcmp.eq.s32.totalorder %v4091_v2, %v3343_v29 }
 0x1e8   :  { %2507 = vmatpush1.bf16.xpose.msk.msra.mxu0 %vm2506_vm8, %v4053_v53  ;;  %vm1234_vm8 = vcmp.eq.s32.totalorder %v4089_v0, %v3343_v29 }
 0x1e9   :  { %2571 = vmatpush1.bf16.xpose.msk.msra.mxu1 %vm2570_vm12, %v4053_v53  ;;  %2509 = vmatprep.subr.msk.bf16.mxu0 %vm2508_vm0, %v4053_v53  ;;  %vm2512_vm12 = vmpackc.low %vm1172_vm4, %vm1170_vm3  ;;  %vm1176_vm3 = vcmp.eq.s32.totalorder %v4092_v3, %v3343_v29 }
 0x1ea   :  { %2573 = vmatprep.subr.msk.bf16.mxu1 %vm2572_vm13, %v4053_v53  ;;  %vm2576_vm0 = vmpackc.low %vm1236_vm10, %vm1234_vm8  ;;  %vm1169_vm13 = vcmp.eq.s32.totalorder %v4087_v62, %v3354_v13  ;;  %vm1240_vm8 = vcmp.eq.s32.totalorder %v4094_v5, %v3343_v29 }
 0x1eb   :  { %vm2514_vm4 = vmpackc.low %vm1171_vm14, %vm1169_vm13  ;;  %vm1175_vm13 = vcmp.eq.s32.totalorder %v4092_v3, %v3354_v13  ;;  %vm1237_vm14 = vcmp.eq.s32.totalorder %v4093_v4, %v3354_v13 }
 0x1ec   :  { %vm2578_vm10 = vmpackc.low %vm1235_vm1, %vm1233_vm15  ;;  %vm1239_vm15 = vcmp.eq.s32.totalorder %v4094_v5, %v3354_v13 }
 0x1f0   :  { %2511 = vmatpush1.bf16.xpose.msk.msra.mxu0 %vm2510_vm7, %v4053_v53  ;;  %vm1238_vm7 = vcmp.eq.s32.totalorder %v4093_v4, %v3343_v29  ;;  %v786_v29 = vrot.slane %v4096_v24, %v3333_v36 }
 0x1f1   :  { %2575 = vmatpush1.bf16.xpose.msk.msra.mxu1 %vm2574_vm11, %v4053_v53  ;;  %2513 = vmatprep.subr.msk.bf16.mxu0 %vm2512_vm12, %v4053_v53  ;;  %vm2516_vm11 = vmpackc.low %vm1176_vm3, %vm1174_vm6  ;;  %vm1044_vm3 = vcmask 1047553  }
 0x1f2   :  { %2577 = vmatprep.subr.msk.bf16.mxu1 %vm2576_vm0, %v4053_v53  ;;  %vm2580_vm12 = vmpackc.low %vm1240_vm8, %vm1238_vm7  ;;  %vm1173_vm0 = vcmp.eq.s32.totalorder %v4091_v2, %v3354_v13  ;;  %v796_v21 = vmul.f32 %v786_v29, %v3726_v20  ;;  %v800_v37 = vmul.f32 %v786_v29, %v3736_v10  ;;  %v982_v2 = vld [vmem:[%s3954_s5 + $0x38] sm:$0x7] }
 0x1f3   :  { %vm2518_vm1 = vmpackc.low %vm1175_vm13, %vm1173_vm0 }
 0x1f4   :  { %vm2582_vm6 = vmpackc.low %vm1239_vm15, %vm1237_vm14  ;;  %vm1068_vm15 = vcmask 7169  }
 0x1f8   :  { %2515 = vmatpush1.bf16.xpose.msk.msra.mxu0 %vm2514_vm4, %v4053_v53  ;;  %vm1054_vm4 = vcmask 1042432  }
 0x1f9   :  { %2579 = vmatpush1.bf16.xpose.msk.msra.mxu1 %vm2578_vm10, %v4053_v53  ;;  %2517 = vmatprep.subr.msk.bf16.mxu0 %vm2516_vm11, %v4053_v53 }
 0x1fa   :  { %2581 = vmatprep.subr.msk.bf16.mxu1 %vm2580_vm12, %v4053_v53  ;;  %vm4097_vm12 = vcmask 1046528  }
 0x1fb   :  { %vm4098_vm0 = vmmov %vm4097_vm12 }
 0x1fc   :  { %vm4099_vm13 = vmmov %vm4098_vm0 }
 0x1fd   :  { %vm4100_vm14 = vmmov %vm4098_vm0 }
 0x200   :  { %2519 = vmatpush1.bf16.xpose.msk.msra.mxu0 %vm2518_vm1, %v4053_v53  ;;  %vm1070_vm1 = vcmask 2048  }
 0x201   :  { %2583 = vmatpush1.bf16.xpose.msk.msra.mxu1 %vm2582_vm6, %v4053_v53  ;;  %v794_v53 = vrot.slane %v3326_v25, %v3333_v36  ;;  %v3749_v25 = vld [vmem:[%s3954_s5 + $0x10] sm:$0xff] }
 0x203   :  { %v798_v33 = vmul.f32 %v794_v53, %v3726_v20  ;;  %v802_v42 = vmul.f32 %v794_v53, %v3736_v10 }
 0x207   :  { %1596 = vmatmul.mubr.bf16.vlgmr.msra.gmra.mrb[8].mxu0 %v1561_v22 }
 0x208   :  { %1637 = vmatmul.mubr.bf16.vlgmr.msra.gmra.mrb[8].mxu1 %v1561_v22  ;;  %1845 = vmatprep.mubr.f32.mxu0 %v4058_v17 }
 0x209   :  { %1922 = vmatprep.mubr.f32.mxu1 %v4058_v17 }
 0x255   :  { %v887_v19 = vpop.f32.mrb[4].mxu0 }
 0x256   :  { %v888_v7 = vadd.f32 %v887_v19, %v795_v15  ;;  %v964_v8 = vpop.f32.mrb[4].mxu1  ;;  %v889_v13 = vpop.f32.mrb[5].mxu0 }
 0x257   :  { %v965_v23 = vadd.f32 %v964_v8, %v797_v6  ;;  %v890_v26 = vadd.f32 %v889_v13, %v796_v21  ;;  %v966_v18 = vpop.f32.mrb[5].mxu1 }
 0x258   :  { %v983_v32 = vadd.f32 %v3742_v16, %v888_v7  ;;  %v967_v34 = vadd.f32 %v966_v18, %v798_v33 }
 0x259   :  { %v985_v38 = vadd.f32 %v3749_v25, %v965_v23  ;;  %v984_v39 = vadd.f32 %v3754_v12, %v890_v26  ;;  %v893_v40 = vpop.f32.mrb[6].mxu0  ;;  %v1690_v23 = vld [vmem:[%s3951_s2] sm:$0x77]  ;;  %v1691_v26 = vld [vmem:[%s3951_s2 + $0x8] sm:$0x77] }
 0x25a   :  { %v1045_v43 = vsel %vm1044_vm3, %v983_v32, 0.0  ;;  %v986_v44 = vadd.f32 %v3760_v27, %v967_v34  ;;  %v1010_v45 = vadd.f32 %v3762_v28, %v983_v32  ;;  %v894_v46 = vadd.f32 %v893_v40, %v799_v31  ;;  %v970_v48 = vpop.f32.mrb[6].mxu1  ;;  %v895_v50 = vpop.f32.mrb[7].mxu0 }
 0x25b   :  { %v1046_v51 = vsel %vm1044_vm3, %v984_v39, 0.0  ;;  %v1011_v52 = vadd.f32 %v3762_v28, %v984_v39  ;;  %v1012_v54 = vadd.f32 %v3762_v28, %v985_v38  ;;  %v971_v55 = vadd.f32 %v970_v48, %v801_v35  ;;  %v972_v58 = vpop.f32.mrb[7].mxu1 }
 0x25c   :  { %v1013_v59 = vadd.f32 %v3762_v28, %v986_v44  ;;  %v987_v61 = vadd.f32 %v979_v41, %v894_v46  ;;  %v896_v62 = vadd.f32 %v895_v50, %v800_v37  ;;  %v973_v63 = vadd.f32 %v972_v58, %v802_v42 }
 0x25d   :  { %v1018_v0 = vcombine.low %v1010_v45, %v1011_v52  ;;  %v989_v1 = vadd.f32 %v981_v49, %v971_v55  ;;  %v1047_v3 = vadd.f32 %v1046_v51, %v1045_v43  ;;  %v1048_v22 = vsel %vm1044_vm3, %v985_v38, 0.0 }
 0x25e   :  { %v1019_v4 = vcombine.low %v1012_v54, %v1013_v59  ;;  %v1055_v5 = vsel %vm1054_vm4, %v987_v61, 0.0  ;;  %v988_v56 = vadd.f32 %v980_v57, %v896_v62  ;;  %v990_v29 = vadd.f32 %v982_v2, %v973_v63 }
 0x25f   :  { %v1026_v9 = vrot.slane %v1018_v0, %v3312_v11  ;;  %v1049_v30 = vadd.f32 %v1048_v22, %v1047_v3  ;;  %v1050_v53 = vsel %vm1044_vm3, %v986_v44, 0.0  ;;  %v1058_v6 = vsel %vm1054_vm4, %v989_v1, 0.0 }
 0x260   :  { %v1033_v14 = vrot.slane %v1019_v4, %v3312_v11  ;;  %v1056_v24 = vsel %vm1054_vm4, %v988_v56, 0.0  ;;  %v1060_v8 = vsel %vm1054_vm4, %v990_v29, 0.0  ;;  %v1694_v18 = vcombine.high %v1690_v23, %v1690_v23  ;;  %v3830_v4 = vpop.xlane.xlu1 %1964 }
 0x261   :  { %v1051_v15 = vadd.f32 %v1050_v53, %v1049_v30  ;;  %v1057_v19 = vadd.f32 %v1056_v24, %v1055_v5  ;;  %v1695_v31 = vcombine.high %v1691_v26, %v1691_v26  ;;  %v1696_v32 = vrot.slane %v1690_v23, 1 }
 0x262   :  { %v1034_v21 = vcombine.low %v1026_v9, %v1033_v14  ;;  %v1698_v34 = vrot.slane %v1691_v26, 1  ;;  %v1697_v35 = vrot.slane %v1694_v18, 1 }
 0x263   :  { %1052 = vadd.xlane.f32.xlu0 %v1051_v15  ;;  %v1059_v7 = vadd.f32 %v1058_v6, %v1057_v19  ;;  %v1699_v37 = vrot.slane %v1695_v31, 1  ;;  %2592 = vst [vmem:[%s3955_s6 + $0x60] ss:$-28 sps:$4 sm:$0x83] %v1696_v32   ;;  %v2649_v19 = vld [vmem:[%s3952_s3] sm:$0xff] }
 0x264   :  { %v1041_v13 = vrot.slane %v1034_v21, %v3312_v11  ;;  %2594 = vst [vmem:[%s3955_s6 + $0x70] ss:$-28 sps:$4 sm:$0x83] %v1698_v34   ;;  %2593 = vst [vmem:[%s3955_s6 + $0x68] ss:$-28 sps:$4 sm:$0x83] %v1697_v35   ;;  %v1009_v15 = vpop.xlane.xlu1 %1008 }
 0x265   :  { %v1061_v33 = vadd.f32 %v1060_v8, %v1059_v7  ;;  %2595 = vst [vmem:[%s3955_s6 + $0x78] ss:$-28 sps:$4 sm:$0x83] %v1699_v37   ;;  %v2650_v8 = vld [vmem:[%s3952_s3 + $0x8] sm:$0x7] }
 0x266   :  { %1043 = vst.msk [vmem:[#allocation2] sm:$0xf] %vm3337_vm5, %v1041_v13 }
 0x267   :  { %1062 = vadd.xlane.f32.xlu1 %v1061_v33 }
 0x2da   :  { %v1597_v38 = vpop.f32.mrb[8].mxu0 }
 0x2db   :  { %v1645_v39 = vmax.f32 %v1597_v38, 1.0  ;;  %vm1673_vm7 = vcmp.gt.f32.partialorder %v1597_v38, 0.5  ;;  %v1638_v40 = vpop.f32.mrb[8].mxu1  ;;  %v1599_v41 = vpop.f32.mrb[9].mxu0 }
 0x2dc   :  { %v3820_v42 = vsel %vm1673_vm7, 1.0, %v4058_v17  ;;  %v1647_v43 = vmax.f32 %v1638_v40, 1.0  ;;  %vm1675_vm8 = vcmp.gt.f32.partialorder %v1638_v40, 0.5  ;;  %v1646_v44 = vmax.f32 %v1599_v41, 1.0  ;;  %v1640_v45 = vpop.f32.mrb[9].mxu1  ;;  %v1601_v46 = vpop.f32.mrb[10].mxu0 }
 0x2dd   :  { %2641 = vrcp.f32 %v1645_v39  ;;  %v2586_v48 = vsel %vm1675_vm8, 1.0, %v4058_v17  ;;  %vm1674_vm10 = vcmp.gt.f32.partialorder %v1599_v41, 0.5  ;;  %v1648_v49 = vmax.f32 %v1640_v45, 1.0  ;;  %v1642_v50 = vpop.f32.mrb[10].mxu1  ;;  %v1602_v51 = vpop.f32.mrb[11].mxu0 }
 0x2de   :  { %2643 = vrcp.f32 %v1647_v43  ;;  %v2585_v52 = vsel %vm1674_vm10, 1.0, %v4058_v17  ;;  %vm1676_vm11 = vcmp.gt.f32.partialorder %v1640_v45, 0.5  ;;  %v1643_v54 = vpop.f32.mrb[11].mxu1  ;;  %v1939_v51 = vld [vmem:[%s3954_s5 + $0x20] sm:$0x7] }
 0x2df   :  { %2645 = vrcp.f32 %v1646_v44  ;;  %v1716_v55 = vcombine.high %v3820_v42, %v2585_v52  ;;  %v2587_v57 = vsel %vm1676_vm11, 1.0, %v4058_v17  ;;  %v1752_v26 = vrot.slane %v2585_v52, %v3333_v36 }
 0x2e0   :  { %2647 = vrcp.f32 %v1648_v49  ;;  %v1717_v58 = vcombine.high %v2586_v48, %v2587_v57  ;;  %v1760_v18 = vrot.slane %v2587_v57, %v3333_v36 }
 0x2e1   :  { %v1724_v59 = vrot.slane %v1716_v55, %v3312_v11  ;;  %v1762_v35 = vmul.f32 %v1752_v26, %v3726_v20 }
 0x2e2   :  { %v1731_v61 = vrot.slane %v1717_v58, %v3312_v11  ;;  %v1768_v52 = vmul.f32 %v1760_v18, %v3736_v10 }
 0x2e4   :  { %v1732_v62 = vcombine.high %v1724_v59, %v1731_v61 }
 0x2e6   :  { %v1739_v63 = vrot.slane %v1732_v62, %v3312_v11 }
 0x2e7   :  { %v2642_v0 = vpop.eup %2641 }
 0x2e8   :  { %v2644_v1 = vpop.eup %2643  ;;  %v1656_v2 = vrot.slane %v2642_v0, %v3333_v36  ;;  %v1740_v3 = vcombine.high %v1739_v63, %v1739_v63  ;;  %v1940_v63 = vld [vmem:[%s3954_s5 + $0x28] sm:$0x7] }
 0x2e9   :  { %v2646_v5 = vpop.eup %2645  ;;  %v1664_v56 = vrot.slane %v2644_v1, %v3333_v36 }
 0x2ea   :  { %v2648_v22 = vpop.eup %2647  ;;  %v1669_v9 = vmul.f32 %v1656_v2, %v1597_v38  ;;  %v1660_v30 = vrot.slane %v2646_v5, %v3333_v36  ;;  %2600 = vst.msk [vmem:[%s3955_s6 + $0x62] ss:$8 sm:$0xf] %vm3337_vm5, %v1740_v3 }
 0x2eb   :  { %v1671_v14 = vmul.f32 %v1664_v56, %v1638_v40  ;;  %v1668_v24 = vrot.slane %v2648_v22, %v3333_v36  ;;  %v1764_v40 = vmul.f32 %v1760_v18, %v3726_v20  ;;  %v1942_v22 = vld [vmem:[%s3954_s5 + $0x38] sm:$0x7] }
 0x2ec   :  { %2588 = vst [vmem:[%s3955_s6 + $0x40] sm:$0x7f] %v1669_v9  ;;  %v1670_v29 = vmul.f32 %v1660_v30, %v1599_v41 }
 0x2ed   :  { %2590 = vst [vmem:[%s3955_s6 + $0x50] sm:$0x7f] %v1671_v14  ;;  %v1672_v53 = vmul.f32 %v1668_v24, %v1640_v45 }
 0x2ee   :  { %2589 = vst [vmem:[%s3955_s6 + $0x48] sm:$0x7f] %v1670_v29  ;;  %2601 = vmatprep.subr.msk.mxu0 %vm4097_vm12, %v1670_v29 }
 0x2ef   :  { %2591 = vst [vmem:[%s3955_s6 + $0x58] sm:$0x7f] %v1672_v53  ;;  %2605 = vmatprep.subr.msk.mxu1 %vm4098_vm0, %v1672_v53  ;;  %2602 = vmatpush1.msk.msra.mxu0 %vm4099_vm13, %v1669_v9 }
 0x2f0   :  { %2606 = vmatpush1.msk.msra.mxu1 %vm4100_vm14, %v1671_v14  ;;  %2603 = vmatmul.mubr.msk.f32.vlgmr.msra.gmra.mrb[12].mxu0 %vm803_vm9, %v2649_v19  ;;  %v1053_v6 = vpop.xlane.xlu0 %1052 }
 0x2f1   :  { %2607 = vmatmul.mubr.msk.f32.vlgmr.msra.gmra.mrb[12].mxu1 %vm803_vm9, %v2649_v19  ;;  %v1064_v21 = vmul.f32 0.001953125, %v1053_v6  ;;  %1851 = vmatprep.mubr.f32.mxu0 %v4058_v17 }
 0x2f2   :  { %1928 = vmatprep.mubr.f32.mxu1 %v4058_v17  ;;  %v1748_v17 = vrot.slane %v3820_v42, %v3333_v36 }
 0x2f3   :  { %v1066_v7 = vadd.f32 %v1064_v21, %v3762_v28  ;;  %v1756_v28 = vrot.slane %v2586_v48, %v3333_v36 }
 0x2f4   :  { %2604 = vmatmul.mubr.msk.f32.gmra.mrb[14].mxu0 %vm803_vm9, %v2650_v8  ;;  %v1063_v13 = vpop.xlane.xlu1 %1062  ;;  %v1761_v31 = vmul.f32 %v1748_v17, %v3726_v20  ;;  %v1765_v36 = vmul.f32 %v1748_v17, %v3736_v10 }
 0x2f5   :  { %1069 = vst.msk [vmem:[%s3957_s8 - $0x1] sm:$0xfe] %vm1068_vm15, %v1066_v7  ;;  %2608 = vmatmul.mubr.msk.f32.gmra.mrb[14].mxu1 %vm803_vm9, %v2650_v8  ;;  %v1065_v33 = vmul.f32 0.001953125, %v1063_v13  ;;  %v1763_v34 = vmul.f32 %v1756_v28, %v3726_v20  ;;  %v1767_v46 = vmul.f32 %v1756_v28, %v3736_v10  ;;  %v1766_v20 = vmul.f32 %v1752_v26, %v3736_v10 }
 0x2f7   :  { %v1067_v23 = vadd.f32 %v1065_v33, %v1009_v15  ;;  %v1954_v33 = vld [vmem:[%s3953_s4 + $0x8] sm:$0x7]  ;;  %s2679_s4 = smov [#allocation2]  }
 0x2f8   :  { %v1962_v18 = vmul.f32 %v3637_v47, %v1954_v33  ;;  %s2036_s12 = sshll.u32 %s2679_s4, 4  ;;  %s2037_s12 = int_to_ptr.vmem [resolvable:$true] %s2036_s12 }
 0x2f9   :  { %1071 = vst.msk [vmem:[%s3957_s8 + $0x7] sm:$0x7] %vm1070_vm1, %v1067_v23  ;;  %s2651_s13 = scalar_lea.vmem %s2037_s12, 128  ;;  %p2656_p1 = scmp.lt.s32.totalorder %s2037_s12, %s2037_s12 }
 0x2fa   :  { %p2652_p0 = scmp.ne.s32.totalorder %s2037_s12, %s2651_s13  ;;  %p2657_p2 = scmp.lt.s32.totalorder %s2651_s13, %s2651_s13 }
 0x2fc   :  { %p2658_p3 = por %p2657_p2, %p2656_p1 }
 0x2fe   :  { %p2659_p4 = pnand %p2658_p3, %p2652_p0 }
 0x3c3   :  { %v1847_v32 = vpop.f32.mrb[12].mxu0 }
 0x3c4   :  { %v1848_v37 = vadd.f32 %v1847_v32, %v1761_v31  ;;  %v1924_v38 = vpop.f32.mrb[12].mxu1  ;;  %v1849_v39 = vpop.f32.mrb[13].mxu0 }
 0x3c5   :  { %v1925_v41 = vadd.f32 %v1924_v38, %v1763_v34  ;;  %v1850_v42 = vadd.f32 %v1849_v39, %v1762_v35  ;;  %v1926_v43 = vpop.f32.mrb[13].mxu1  ;;  %v1966_v34 = vsel %vm1006_vm2, %v1962_v18, 0.0 }
 0x3c6   :  { %v1943_v44 = vadd.f32 %v1848_v37, %v3742_v16  ;;  %v1927_v45 = vadd.f32 %v1926_v43, %v1764_v40 }
 0x3c7   :  { %v1945_v48 = vadd.f32 %v1925_v41, %v3749_v25  ;;  %v1944_v49 = vadd.f32 %v1850_v42, %v3754_v12  ;;  %v1853_v50 = vpop.f32.mrb[14].mxu0  ;;  %v1941_v25 = vld [vmem:[%s3954_s5 + $0x30] sm:$0x7] }
 0x3c8   :  { %v1969_v16 = vadd.f32 %v3830_v4, %v1943_v44  ;;  %v2004_v54 = vsel %vm1044_vm3, %v1943_v44, 0.0  ;;  %v1946_v55 = vadd.f32 %v1927_v45, %v3760_v27  ;;  %v1854_v57 = vadd.f32 %v1853_v50, %v1765_v36  ;;  %v1930_v58 = vpop.f32.mrb[14].mxu1  ;;  %v1855_v12 = vpop.f32.mrb[15].mxu0 }
 0x3c9   :  { %v1971_v59 = vadd.f32 %v3830_v4, %v1945_v48  ;;  %v1970_v61 = vadd.f32 %v3830_v4, %v1944_v49  ;;  %v2005_v62 = vsel %vm1044_vm3, %v1944_v49, 0.0  ;;  %v1931_v10 = vadd.f32 %v1930_v58, %v1767_v46  ;;  %v1932_v0 = vpop.f32.mrb[15].mxu1 }
 0x3ca   :  { %v1972_v27 = vadd.f32 %v3830_v4, %v1946_v55  ;;  %v1947_v1 = vadd.f32 %v1939_v51, %v1854_v57  ;;  %v1856_v2 = vadd.f32 %v1855_v12, %v1766_v20  ;;  %v1933_v3 = vadd.f32 %v1932_v0, %v1768_v52 }
 0x3cb   :  { %v1977_v5 = vcombine.low %v1969_v16, %v1970_v61  ;;  %v1949_v56 = vadd.f32 %v1941_v25, %v1931_v10  ;;  %v2006_v9 = vadd.f32 %v2005_v62, %v2004_v54  ;;  %v2007_v29 = vsel %vm1044_vm3, %v1945_v48, 0.0 }
 0x3cc   :  { %v1978_v30 = vcombine.low %v1971_v59, %v1972_v27  ;;  %v2013_v14 = vsel %vm1054_vm4, %v1947_v1, 0.0  ;;  %v1948_v24 = vadd.f32 %v1940_v63, %v1856_v2  ;;  %v1950_v21 = vadd.f32 %v1942_v22, %v1933_v3 }
 0x3cd   :  { %v1985_v53 = vrot.slane %v1977_v5, %v3312_v11  ;;  %v2008_v15 = vadd.f32 %v2007_v29, %v2006_v9  ;;  %v2009_v7 = vsel %vm1044_vm3, %v1946_v55, 0.0  ;;  %v2016_v17 = vsel %vm1054_vm4, %v1949_v56, 0.0 }
 0x3ce   :  { %v1992_v19 = vrot.slane %v1978_v30, %v3312_v11  ;;  %v2014_v6 = vsel %vm1054_vm4, %v1948_v24, 0.0  ;;  %v2018_v26 = vsel %vm1054_vm4, %v1950_v21, 0.0 }
 0x3cf   :  { %v2010_v8 = vadd.f32 %v2009_v7, %v2008_v15  ;;  %v2015_v13 = vadd.f32 %v2014_v6, %v2013_v14 }
 0x3d0   :  { %v1993_v23 = vcombine.low %v1985_v53, %v1992_v19 }
 0x3d1   :  { %2011 = vadd.xlane.f32.xlu1 %v2010_v8  ;;  %v2017_v28 = vadd.f32 %v2016_v17, %v2015_v13 }
 0x3d2   :  { %v2000_v31 = vrot.slane %v1993_v23, %v3312_v11 }
 0x3d3   :  { %v2019_v32 = vadd.f32 %v2018_v26, %v2017_v28 }
 0x3d4   :  { %2003 = vst.msk [vmem:[#allocation2 + $0x4] sm:$0xf] %vm3337_vm5, %v2000_v31 }
 0x3d5   :  { %2020 = vadd.xlane.f32.xlu1 %v2019_v32 }
 0x3d9   :  { %1967 = vadd.xlane.f32.xlu1 %v1966_v34 }
 0x3da   :  { %2662 = shalt.err (!%p2659_p4)
}
 0x3db   :  { %s2663_s16 = scalar_lea.hbm %s3956_s7, 128 }
 0x3dc   :  { %p2664_p5 = scmp.ne.s32.totalorder %s3956_s7, %s2663_s16  ;;  %p2667_p6 = scmp.lt.u32.totalorder %s2663_s16, %s3956_s7 }
 0x3de   :  { %p2669_p7 = pnand %p2667_p6, %p2664_p5 }
 0x3e0   :  { %2672 = shalt.err (!%p2669_p7)
}
 0x3e1   :  { %s2680_s21 = smov 64   ;;  %s2681_s22 = smov 4  }
 0x3e2   :  { %2042 = dma.vmem_to_hbm [thread:$0]  %s2037_s12, 128, %s3956_s7, [#allocation3], %s2680_s21, %s2680_s21, %s2681_s22  }
 0x45e   :  { %v2012_v11 = vpop.xlane.xlu1 %2011 }
 0x45f   :  { %v2022_v60 = vmul.f32 0.001953125, %v2012_v11 }
 0x461   :  { %v2024_v47 = vadd.f32 %v2022_v60, %v3830_v4 }
 0x462   :  { %v2021_v35 = vpop.xlane.xlu1 %2020 }
 0x463   :  { %2611 = vst.msk [vmem:[%s3957_s8 + $0xf] sm:$0xfe] %vm1068_vm15, %v2024_v47  ;;  %v2023_v37 = vmul.f32 0.001953125, %v2021_v35 }
 0x466   :  { %v1968_v38 = vpop.xlane.xlu1 %1967 }
 0x467   :  { %v2025_v39 = vadd.f32 %v2023_v37, %v1968_v38 }
 0x469   :  { %2612 = vst.msk [vmem:[%s3957_s8 + $0x17] sm:$0x7] %vm1070_vm1, %v2025_v39 }
 0x46a   :  { %2673 = dma.done.wait [#allocation3], 128  }
 0x46b   :  { %2674 = vsyncadd [#allocation3], 4294967168 }
 0x46c   :  { %2052 = vsyncpa [#allocation3], 1 }

</bundles_post_ra>
